<compile_context>
chip_gen: v7x
topology: tpu7x:2x2x1
jax: 0.10.0
libtpu: 0.0.40
codegen_flags: <defaults>
</compile_context>

<pallas_src>
import numpy as np
import jax
import jax.numpy as jnp
from jax.experimental import pallas as pl
from jax.experimental.pallas import tpu as pltpu

# ----- loss hyper-parameters (match FEDASLoss.__init__ defaults) -------------
LAMBDA1, LAMBDA2, LAMBDA3 = 0.3, 0.2, 0.3
ALPHA, GAMMA, BETA, DELTA = 0.6, 0.5, 0.4, 0.3
MU = 5.0

_LANES = 128
# per-sample partial-sum slots in the (B, 128) lane-padded output
(_S_DICE, _S_PIX, _S_COSX, _S_COSY, _S_COHX, _S_COHY) = range(6)


# ----- shared elementwise math ------------------------------------------------
def _bce_elem(p, t):
    # F.binary_cross_entropy elementwise term (log clamped at -100 like PyTorch)
    logp = jnp.maximum(jnp.log(p), -100.0)
    log1mp = jnp.maximum(jnp.log(1.0 - p), -100.0)
    return -(t * logp + (1.0 - t) * log1mp)


def _rsum(x):
    """Reduce the trailing two axes of (TB, A, B) -> (TB, 1), staying 2-D."""
    return jnp.sum(jnp.sum(x, axis=-1), axis=-1, keepdims=True)


# ----- Pallas kernels ---------------------------------------------------------
def _make_fedas_kernel(TB, H, W, Hf, Wf, region_is_pred):
    """Full loss kernel: one grid step = TB samples, per-sample partials out."""
    # static per-pixel weights so the linear terms merge into ONE reduction
    w_bce = (1.0 - ALPHA) + LAMBDA3 + (LAMBDA2 if region_is_pred else 0.0)
    w_bnd = LAMBDA3 * MU                 # boundary-weighted bce
    w_rbce = LAMBDA2                     # region bce
    w_topo = LAMBDA3 * DELTA / 9.0       # |box3sum(pbin) - box3sum(t)| / 9
    do_topo = (H > 2) and (W > 2)        # matches the reference's static skip

    def kernel(*args):
        if region_is_pred:
            (pred_ref, target_ref, fmean_ref, tres_ref, cnt_ref,
             out_ref, pad_ref) = args
            region_ref = None
        else:
            (pred_ref, target_ref, region_ref, fmean_ref, tres_ref, cnt_ref,
             out_ref, pad_ref) = args

        p = pred_ref[...].astype(jnp.float32)      # (TB, H, W)
        t = target_ref[...].astype(jnp.float32)    # (TB, H, W)
        fm = fmean_ref[...].astype(jnp.float32)    # (TB, Hf, Wf)
        tr = tres_ref[...].astype(jnp.float32)     # (TB, Hf, Wf)
        cnt = cnt_ref[...]                         # (H, W) 3x3 neighbour count
        eps = jnp.float32(1e-6)
        ce = jnp.float32(1e-8)                     # torch cosine_similarity eps

        # ---------- dice (non-linear per sample -> its own slot) --------------
        inter = _rsum(p * t)
        dice = 1.0 - (2.0 * inter + eps) / (_rsum(p * p) + _rsum(t * t) + eps)

        bce = _bce_elem(p, t)

        # ---------- 3x3 zero-padded box SUM via shifted adds (VPU only) -------
        pad_ref[...] = jnp.zeros_like(pad_ref)     # border must stay zero
        def box3_sum(x):
            pad_ref[:, pl.ds(1, H), pl.ds(1, W)] = x
            rs = (pad_ref[:, pl.ds(0, H), :]
                  + pad_ref[:, pl.ds(1, H), :]
                  + pad_ref[:, pl.ds(2, H), :])    # (TB, H, W + 2)
            return rs[:, :, 0:W] + rs[:, :, 1:W + 1] + rs[:, :, 2:W + 2]

        bt = box3_sum(t)                           # reused: dilate / erode / topo
        dil = (bt > 0.9).astype(jnp.float32)                     # (bt/9) > 0.1
        ero = 1.0 - ((cnt[None, :, :] - bt) > 0.9).astype(jnp.float32)
        bnd = jnp.clip(dil - ero, 0.0, 1.0)

        # ---------- one combined weighted pixel map ----------------------------
        combined = (w_bce + w_bnd * bnd) * bce
        if region_is_pred:
            r = p                                   # reuse bce map via w_bce fold
        else:
            r = region_ref[...].astype(jnp.float32)
            combined = combined + w_rbce * _bce_elem(r, t)
        if do_topo:
            pbin = (p > 0.5).astype(jnp.float32)
            combined = combined + w_topo * jnp.abs(box3_sum(pbin) - bt)
        pix = _rsum(combined)

        # ---------- fidelity (direction consistency) cosine sums ---------------
        if Wf > 1:
            fgx = fm[:, :, 1:] - fm[:, :, :-1]
            tgx = tr[:, :, 1:] - tr[:, :, :-1]
            cosx = _rsum((fgx * tgx) / (jnp.maximum(jnp.abs(fgx), ce)
                                        * jnp.maximum(jnp.abs(tgx), ce)))
        else:
            cosx = jnp.zeros((TB, 1), jnp.float32)
        if Hf > 1:
            fgy = fm[:, 1:, :] - fm[:, :-1, :]
            tgy = tr[:, 1:, :] - tr[:, :-1, :]
            cosy = _rsum((fgy * tgy) / (jnp.maximum(jnp.abs(fgy), ce)
                                        * jnp.maximum(jnp.abs(tgy), ce)))
        else:
            cosy = jnp.zeros((TB, 1), jnp.float32)

        # ---------- region coherence sums ---------------------------------------
        if W > 1:
            cohx = _rsum(jnp.abs(r[:, :, 1:] - r[:, :, :-1])
                         * (1.0 - jnp.abs(t[:, :, 1:] - t[:, :, :-1])))
        else:
            cohx = jnp.zeros((TB, 1), jnp.float32)
        if H > 1:
            cohy = _rsum(jnp.abs(r[:, 1:, :] - r[:, :-1, :])
                         * (1.0 - jnp.abs(t[:, 1:, :] - t[:, :-1, :])))
        else:
            cohy = jnp.zeros((TB, 1), jnp.float32)

        # ---------- pack per-sample partials into one lane-dense store ----------
        lane = jax.lax.broadcasted_iota(jnp.int32, (TB, _LANES), 1)
        out = jnp.zeros((TB, _LANES), jnp.float32)
        for k, v in ((_S_DICE, dice), (_S_PIX, pix), (_S_COSX, cosx),
                     (_S_COSY, cosy), (_S_COHX, cohx), (_S_COHY, cohy)):
            out = jnp.where(lane == k, v, out)
        out_ref[0] = out

    return kernel


def _make_seg_kernel(TB):
    """Segmentation-only loss (tensor path): per-sample dice + bce-sum slots."""
    def kernel(pred_ref, target_ref, out_ref):
        p = pred_ref[...].astype(jnp.float32)
        t = target_ref[...].astype(jnp.float32)
        eps = jnp.float32(1e-6)
        inter = _rsum(p * t)
        dice = 1.0 - (2.0 * inter + eps) / (_rsum(p * p) + _rsum(t * t) + eps)
        bce = _rsum(_bce_elem(p, t))
        lane = jax.lax.broadcasted_iota(jnp.int32, (TB, _LANES), 1)
        out = jnp.zeros((TB, _LANES), jnp.float32)
        out = jnp.where(lane == 0, dice, out)
        out = jnp.where(lane == 1, bce, out)
        out_ref[0] = out
    return kernel


# ----- host-side glue ---------------------------------------------------------
def _bilinear_matrix(out_size, in_size):
    """1D bilinear resize matrix, PyTorch align_corners=False semantics."""
    M = np.zeros((out_size, in_size), dtype=np.float32)
    scale = in_size / out_size
    for o in range(out_size):
        src = (o + 0.5) * scale - 0.5
        i0 = int(np.floor(src))
        w1 = src - i0
        i0c = min(max(i0, 0), in_size - 1)
        i1c = min(max(i0 + 1, 0), in_size - 1)
        M[o, i0c] += 1.0 - w1
        M[o, i1c] += w1
    return M


def _resize_bilinear_bhw(x, out_h, out_w):
    """Bilinear resize (align_corners=False): (B, H, W) -> (B, out_h, out_w)."""
    _, H, W = x.shape
    RH = jnp.asarray(_bilinear_matrix(out_h, H))
    RW = jnp.asarray(_bilinear_matrix(out_w, W))
    y = jnp.einsum("gh,bhw->bgw", RH, x, precision=jax.lax.Precision.HIGHEST)
    return jnp.einsum("bgw,fw->bgf", y, RW, precision=jax.lax.Precision.HIGHEST)


def _count_map_np(H, W):
    """3x3 zero-padded neighbour count map (4/6/9 at corners/edges/interior)."""
    r = 1 + np.minimum(np.arange(H), 1) + np.minimum(H - 1 - np.arange(H), 1)
    c = 1 + np.minimum(np.arange(W), 1) + np.minimum(W - 1 - np.arange(W), 1)
    return (r[:, None] * c[None, :]).astype(np.float32)


def _vmem_capacity_bytes():
    try:
        return int(pltpu.get_tpu_info().vmem_capacity_bytes)
    except Exception:
        return 64 * 1024 * 1024          # conservative (v7x per-TC size)


def _choose_tb(B, per_sample_bytes):
    """Largest divisor of B whose per-step working set fits the VMEM budget."""
    budget = max(8 << 20, _vmem_capacity_bytes() // 6)   # room for dbl-buffering
    tb = 1
    for d in range(1, B + 1):
        if B % d == 0 and d * per_sample_bytes <= budget:
            tb = d
    return tb


def _vmem_limit_bytes(per_step_io_bytes, scratch_bytes):
    cap = _vmem_capacity_bytes()
    est = 2 * per_step_io_bytes + scratch_bytes + (4 << 20)
    hi = max(16 << 20, cap - (8 << 20))
    return int(min(hi, max(16 << 20, est)))


def _seg_loss_pallas(p, t):
    B, H, W = p.shape
    itemsize = max(jnp.dtype(p.dtype).itemsize, jnp.dtype(t.dtype).itemsize)
    per_sample = 2 * H * W * itemsize + _LANES * 4
    TB = _choose_tb(B, per_sample)
    nsteps = B // TB
    parts = pl.pallas_call(
        _make_seg_kernel(TB),
        out_shape=jax.ShapeDtypeStruct((nsteps, TB, _LANES), jnp.float32),
        grid=(nsteps,),
        in_specs=[pl.BlockSpec((TB, H, W), lambda i: (i, 0, 0)),
                  pl.BlockSpec((TB, H, W), lambda i: (i, 0, 0))],
        out_specs=pl.BlockSpec((1, TB, _LANES), lambda i: (i, 0, 0)),
        compiler_params=pltpu.CompilerParams(
            dimension_semantics=("parallel",),
            vmem_limit_bytes=_vmem_limit_bytes(TB * per_sample, 0)),
        cost_estimate=pl.CostEstimate(
            flops=int(15 * B * H * W),
            transcendentals=int(2 * B * H * W),
            bytes_accessed=int(2 * B * H * W * itemsize + 4 * B * _LANES)),
    )(p, t).reshape(B, _LANES)
    return (ALPHA * jnp.mean(parts[:, 0])
            + (1.0 - ALPHA) * jnp.sum(parts[:, 1]) / float(B * H * W))


def fedas_loss(outputs, targets):
    """Pallas implementation of FEDASLoss.forward.

    outputs: dict with keys 'out', 'hr_feat', 'region_map' (NCHW, C==1 masks)
             or a plain (B,1,H,W) prediction tensor.
    targets: (B,1,H,W) float mask.
    """
    B, C, H, W = targets.shape
    assert C == 1, "reference module's (1,1,3,3) conv weight requires C == 1"
    t = targets.reshape(B, H, W)

    # ---- tensor path: segmentation loss only --------------------------------
    if not isinstance(outputs, dict):
        return _seg_loss_pallas(outputs.reshape(B, H, W), t)

    # ---- dict path: full loss -------------------------------------------------
    pred = outputs["out"]
    region = outputs.get("region_map", pred)
    hr_feat = outputs.get("hr_feat")
    # TODO(synk): hr_feat=None dict path (fidelity term == 0) is not wired here.
    assert hr_feat is not None
    # TODO(synk): bilinear resize of mismatched region_map / pred to target size
    #             is not implemented; shapes must already match.
    assert pred.shape[2:] == targets.shape[2:] and region.shape[2:] == targets.shape[2:]

    region_is_pred = region is pred
    p = pred.reshape(B, H, W)
    r = None if region_is_pred else region.reshape(B, H, W)

    _, Cf, Hf, Wf = hr_feat.shape
    # tiny linear preprocessing in XLA: channel mean + bilinear resize of target
    fmean = jnp.mean(hr_feat.astype(jnp.float32), axis=1)           # (B,Hf,Wf)
    tres = _resize_bilinear_bhw(t.astype(jnp.float32), Hf, Wf)      # (B,Hf,Wf)
    cnt = jnp.asarray(_count_map_np(H, W))                          # (H,W) resident

    itemsize = max(jnp.dtype(p.dtype).itemsize, jnp.dtype(t.dtype).itemsize)
    n_masks = 2 if region_is_pred else 3
    per_sample_io = n_masks * H * W * itemsize + 2 * Hf * Wf * 4 + _LANES * 4
    per_sample = per_sample_io + (H + 2) * (W + 2) * 4              # + pad scratch
    TB = _choose_tb(B, per_sample)
    nsteps = B // TB
    per_step_io = TB * per_sample_io + H * W * 4
    scratch_bytes = TB * (H + 2) * (W + 2) * 4

    mask_spec = pl.BlockSpec((TB, H, W), lambda i: (i, 0, 0))
    feat_spec = pl.BlockSpec((TB, Hf, Wf), lambda i: (i, 0, 0))
    in_arrays = [p, t] + ([] if region_is_pred else [r]) + [fmean, tres, cnt]
    in_specs = ([mask_spec, mask_spec]
                + ([] if region_is_pred else [mask_spec])
                + [feat_spec, feat_spec,
                   pl.BlockSpec((H, W), lambda i: (0, 0))])         # cnt resident

    cost = pl.CostEstimate(
        flops=int(B * (60 * H * W + 25 * Hf * Wf)),
        transcendentals=int((2 if region_is_pred else 4) * B * H * W),
        bytes_accessed=int(n_masks * B * H * W * itemsize + 8 * B * Hf * Wf
                           + 4 * H * W + 4 * B * _LANES))

    parts = pl.pallas_call(
        _make_fedas_kernel(TB, H, W, Hf, Wf, region_is_pred),
        out_shape=jax.ShapeDtypeStruct((nsteps, TB, _LANES), jnp.float32),
        grid=(nsteps,),
        in_specs=in_specs,
        out_specs=pl.BlockSpec((1, TB, _LANES), lambda i: (i, 0, 0)),
        scratch_shapes=[pltpu.VMEM((TB, H + 2, W + 2), jnp.float32)],
        compiler_params=pltpu.CompilerParams(
            dimension_semantics=("parallel",),
            vmem_limit_bytes=_vmem_limit_bytes(per_step_io, scratch_bytes)),
        cost_estimate=cost,
    )(*in_arrays).reshape(B, _LANES)

    # ---- tiny final linear combination of per-sample partials (plain JAX) ----
    n_hw = float(B * H * W)
    loss = ALPHA * jnp.mean(parts[:, _S_DICE]) + jnp.sum(parts[:, _S_PIX]) / n_hw
    loss_x = (1.0 - jnp.sum(parts[:, _S_COSX]) / float(B * Hf * (Wf - 1))) if Wf > 1 else 0.0
    loss_y = (1.0 - jnp.sum(parts[:, _S_COSY]) / float(B * (Hf - 1) * Wf)) if Hf > 1 else 0.0
    loss = loss + LAMBDA1 * GAMMA * (loss_x + loss_y)
    coh = 0.0
    ncoh = 0
    if W > 1:
        coh = coh + jnp.sum(parts[:, _S_COHX]) / float(B * H * (W - 1))
        ncoh += 1
    if H > 1:
        coh = coh + jnp.sum(parts[:, _S_COHY]) / float(B * (H - 1) * W)
        ncoh += 1
    loss = loss + LAMBDA2 * BETA * (coh / max(ncoh, 1))
    return loss


# ----- plain-JAX references (independent of the Pallas lowering) --------------
def _reference_seg(pred, target):
    eps = 1e-6
    inter = jnp.sum(pred * target, axis=(1, 2))
    dice = 1.0 - (2.0 * inter + eps) / (jnp.sum(pred * pred, axis=(1, 2))
                                        + jnp.sum(target * target, axis=(1, 2)) + eps)
    return ALPHA * jnp.mean(dice) + (1.0 - ALPHA) * jnp.mean(_bce_elem(pred, target))


def _reference_full(pred, target, region, feat):
    B, H, W = pred.shape
    eps = 1e-6
    inter = jnp.sum(pred * target, axis=(1, 2))
    dice = 1.0 - (2.0 * inter + eps) / (jnp.sum(pred * pred, axis=(1, 2))
                                        + jnp.sum(target * target, axis=(1, 2)) + eps)
    bce_map = _bce_elem(pred, target)
    seg = ALPHA * jnp.mean(dice) + (1.0 - ALPHA) * jnp.mean(bce_map)

    _, Cf, Hf, Wf = feat.shape
    fmean = jnp.mean(feat.astype(jnp.float32), axis=1)
    tres = _resize_bilinear_bhw(target.astype(jnp.float32), Hf, Wf)
    ce = 1e-8

    def cosm(a, b):
        return jnp.mean((a * b) / (jnp.maximum(jnp.abs(a), ce)
                                   * jnp.maximum(jnp.abs(b), ce)))

    loss_x = (1.0 - cosm(fmean[:, :, 1:] - fmean[:, :, :-1],
                         tres[:, :, 1:] - tres[:, :, :-1])) if Wf > 1 else 0.0
    loss_y = (1.0 - cosm(fmean[:, 1:, :] - fmean[:, :-1, :],
                         tres[:, 1:, :] - tres[:, :-1, :])) if Hf > 1 else 0.0
    fidelity = GAMMA * (loss_x + loss_y)

    rbce = jnp.mean(_bce_elem(region, target))
    cohx = jnp.mean(jnp.abs(region[:, :, 1:] - region[:, :, :-1])
                    * (1.0 - jnp.abs(target[:, :, 1:] - target[:, :, :-1])))
    cohy = jnp.mean(jnp.abs(region[:, 1:, :] - region[:, :-1, :])
                    * (1.0 - jnp.abs(target[:, 1:, :] - target[:, :-1, :])))
    region_loss = rbce + BETA * (cohx + cohy) / 2.0

    def box3(x):
        xp = jnp.pad(x, ((0, 0), (1, 1), (1, 1)))
        return sum(xp[:, i:i + H, j:j + W] for i in range(3) for j in range(3)) / 9.0

    bt = box3(target)
    dil = (bt > 0.1).astype(jnp.float32)
    ero = 1.0 - (box3(1.0 - target) > 0.1).astype(jnp.float32)
    boundary = jnp.clip(dil - ero, 0.0, 1.0)
    bw = jnp.mean((1.0 + MU * boundary) * bce_map)
    topo = jnp.mean(jnp.abs(box3((pred > 0.5).astype(jnp.float32)) - bt))
    boundary_loss = bw + DELTA * topo
    return seg + LAMBDA1 * fidelity + LAMBDA2 * region_loss + LAMBDA3 * boundary_loss


# ----- demo / self-check ------------------------------------------------------
if __name__ == "__main__":
    key = jax.random.PRNGKey(0)
    k1, k2, k3, k4 = jax.random.split(key, 4)

    B, C, H, W = 2, 1, 16, 16
    Cf, Hf, Wf = 8, 8, 8

    pred = jax.nn.sigmoid(jax.random.normal(k1, (B, C, H, W), jnp.float32))
    target = (jax.random.uniform(k2, (B, C, H, W)) > 0.5).astype(jnp.float32)
    region = jax.nn.sigmoid(jax.random.normal(k3, (B, C, H, W), jnp.float32))
    hr_feat = jax.random.normal(k4, (B, Cf, Hf, Wf), jnp.float32)

    outputs = {
        "out": pred,
        "hr_feat": hr_feat,
        "mr_feat": None,   # unused by the reference forward
        "lr_feat": None,   # unused by the reference forward
        "region_map": region,
        "boundary": pred,  # interpolated but never used by the reference forward
    }

    # dict path (full loss) and tensor path (segmentation only)
    loss = jax.block_until_ready(fedas_loss(outputs, target))
    seg_only = jax.block_until_ready(fedas_loss(pred, target))

    # plain-JAX references of the same math
    ref = _reference_full(pred.reshape(B, H, W), target.reshape(B, H, W),
                          region.reshape(B, H, W), hr_feat)
    ref_seg = _reference_seg(pred.reshape(B, H, W), target.reshape(B, H, W))

    assert np.isfinite(float(loss)) and np.isfinite(float(seg_only))
    np.testing.assert_allclose(float(loss), float(ref), rtol=1e-4, atol=1e-4)
    np.testing.assert_allclose(float(seg_only), float(ref_seg), rtol=1e-4, atol=1e-4)

    print("KERNEL_OK")
</pallas_src>

<mosaic_0001>
module attributes {stable_mosaic.version = 11 : i64} {
  func.func @kernel(%arg0: i32, %arg1: memref<2x16x16xf32, #tpu.memory_space<vmem>>, %arg2: memref<2x16x16xf32, #tpu.memory_space<vmem>>, %arg3: memref<2x16x16xf32, #tpu.memory_space<vmem>>, %arg4: memref<2x8x8xf32, #tpu.memory_space<vmem>>, %arg5: memref<2x8x8xf32, #tpu.memory_space<vmem>>, %arg6: memref<16x16xf32, #tpu.memory_space<vmem>>, %arg7: memref<1x2x128xf32, #tpu.memory_space<vmem>>, %arg8: memref<2x18x18xf32, #tpu.memory_space<vmem>>) attributes {dimension_semantics = [#tpu.dimension_semantics<parallel>], iteration_bounds = array<i64: 1>, scalar_prefetch = 0 : i64, scratch_operands = 1 : i64, tpu.core_type = #tpu.core_type<tc>, window_params = [{transform_indices = @transform_0, window_bounds = array<i64: 2, 16, 16>}, {transform_indices = @transform_1, window_bounds = array<i64: 2, 16, 16>}, {transform_indices = @transform_2, window_bounds = array<i64: 2, 16, 16>}, {transform_indices = @transform_3, window_bounds = array<i64: 2, 8, 8>}, {transform_indices = @transform_4, window_bounds = array<i64: 2, 8, 8>}, {pipeline_mode = #tpu.pipeline_mode<synchronous>, transform_indices = @transform_5, window_bounds = array<i64: 16, 16>}, {transform_indices = @transform_6, window_bounds = array<i64: 1, 2, 128>}]} {
    %c0 = arith.constant 0 : index
    %c0_0 = arith.constant 0 : index
    %c0_1 = arith.constant 0 : index
    %0 = vector.load %arg1[%c0, %c0_0, %c0_1] : memref<2x16x16xf32, #tpu.memory_space<vmem>>, vector<2x16x16xf32>
    %c0_2 = arith.constant 0 : index
    %c0_3 = arith.constant 0 : index
    %c0_4 = arith.constant 0 : index
    %1 = vector.load %arg2[%c0_2, %c0_3, %c0_4] : memref<2x16x16xf32, #tpu.memory_space<vmem>>, vector<2x16x16xf32>
    %c0_5 = arith.constant 0 : index
    %c0_6 = arith.constant 0 : index
    %c0_7 = arith.constant 0 : index
    %2 = vector.load %arg4[%c0_5, %c0_6, %c0_7] : memref<2x8x8xf32, #tpu.memory_space<vmem>>, vector<2x8x8xf32>
    %c0_8 = arith.constant 0 : index
    %c0_9 = arith.constant 0 : index
    %c0_10 = arith.constant 0 : index
    %3 = vector.load %arg5[%c0_8, %c0_9, %c0_10] : memref<2x8x8xf32, #tpu.memory_space<vmem>>, vector<2x8x8xf32>
    %c0_11 = arith.constant 0 : index
    %c0_12 = arith.constant 0 : index
    %4 = vector.load %arg6[%c0_11, %c0_12] : memref<16x16xf32, #tpu.memory_space<vmem>>, vector<16x16xf32>
    %5 = arith.mulf %0, %1 : vector<2x16x16xf32>
    %cst = arith.constant dense<0.000000e+00> : vector<2x16xf32>
    %6 = vector.multi_reduction <add>, %5, %cst [2] : vector<2x16x16xf32> to vector<2x16xf32>
    %cst_13 = arith.constant dense<0.000000e+00> : vector<2xf32>
    %7 = vector.multi_reduction <add>, %6, %cst_13 [1] : vector<2x16xf32> to vector<2xf32>
    %8 = vector.shape_cast %7 : vector<2xf32> to vector<2x1xf32>
    %cst_14 = arith.constant 2.000000e+00 : f32
    %9 = vector.broadcast %cst_14 : f32 to vector<2x1xf32>
    %10 = arith.mulf %9, %8 : vector<2x1xf32>
    %cst_15 = arith.constant 9.99999997E-7 : f32
    %11 = vector.broadcast %cst_15 : f32 to vector<2x1xf32>
    %12 = arith.addf %10, %11 : vector<2x1xf32>
    %13 = arith.mulf %0, %0 : vector<2x16x16xf32>
    %cst_16 = arith.constant dense<0.000000e+00> : vector<2x16xf32>
    %14 = vector.multi_reduction <add>, %13, %cst_16 [2] : vector<2x16x16xf32> to vector<2x16xf32>
    %cst_17 = arith.constant dense<0.000000e+00> : vector<2xf32>
    %15 = vector.multi_reduction <add>, %14, %cst_17 [1] : vector<2x16xf32> to vector<2xf32>
    %16 = vector.shape_cast %15 : vector<2xf32> to vector<2x1xf32>
    %17 = arith.mulf %1, %1 : vector<2x16x16xf32>
    %cst_18 = arith.constant dense<0.000000e+00> : vector<2x16xf32>
    %18 = vector.multi_reduction <add>, %17, %cst_18 [2] : vector<2x16x16xf32> to vector<2x16xf32>
    %cst_19 = arith.constant dense<0.000000e+00> : vector<2xf32>
    %19 = vector.multi_reduction <add>, %18, %cst_19 [1] : vector<2x16xf32> to vector<2xf32>
    %20 = vector.shape_cast %19 : vector<2xf32> to vector<2x1xf32>
    %21 = arith.addf %16, %20 : vector<2x1xf32>
    %cst_20 = arith.constant 9.99999997E-7 : f32
    %22 = vector.broadcast %cst_20 : f32 to vector<2x1xf32>
    %23 = arith.addf %21, %22 : vector<2x1xf32>
    %24 = arith.divf %12, %23 : vector<2x1xf32>
    %cst_21 = arith.constant 1.000000e+00 : f32
    %25 = vector.broadcast %cst_21 : f32 to vector<2x1xf32>
    %26 = arith.subf %25, %24 : vector<2x1xf32>
    %27 = math.log %0 : vector<2x16x16xf32>
    %cst_22 = arith.constant -1.000000e+02 : f32
    %28 = vector.broadcast %cst_22 : f32 to vector<2x16x16xf32>
    %29 = arith.maximumf %27, %28 : vector<2x16x16xf32>
    %cst_23 = arith.constant 1.000000e+00 : f32
    %30 = vector.broadcast %cst_23 : f32 to vector<2x16x16xf32>
    %31 = arith.subf %30, %0 : vector<2x16x16xf32>
    %32 = math.log %31 : vector<2x16x16xf32>
    %cst_24 = arith.constant -1.000000e+02 : f32
    %33 = vector.broadcast %cst_24 : f32 to vector<2x16x16xf32>
    %34 = arith.maximumf %32, %33 : vector<2x16x16xf32>
    %35 = arith.mulf %1, %29 : vector<2x16x16xf32>
    %cst_25 = arith.constant 1.000000e+00 : f32
    %36 = vector.broadcast %cst_25 : f32 to vector<2x16x16xf32>
    %37 = arith.subf %36, %1 : vector<2x16x16xf32>
    %38 = arith.mulf %37, %34 : vector<2x16x16xf32>
    %39 = arith.addf %35, %38 : vector<2x16x16xf32>
    %cst_26 = arith.constant 0.000000e+00 : f32
    %40 = vector.broadcast %cst_26 : f32 to vector<2x16x16xf32>
    %41 = arith.subf %40, %39 : vector<2x16x16xf32>
    %cst_27 = arith.constant 0.000000e+00 : f32
    %42 = vector.broadcast %cst_27 : f32 to vector<2x18x18xf32>
    %c0_28 = arith.constant 0 : index
    %c0_29 = arith.constant 0 : index
    %c0_30 = arith.constant 0 : index
    %43 = vector.load %arg8[%c0_28, %c0_29, %c0_30] : memref<2x18x18xf32, #tpu.memory_space<vmem>>, vector<2x18x18xf32>
    tpu.vector_store %arg8[%c0_28, %c0_29, %c0_30], %42 {strides = array<i32>} : memref<2x18x18xf32, #tpu.memory_space<vmem>>, vector<2x18x18xf32>,
    %c0_31 = arith.constant 0 : index
    %c1 = arith.constant 1 : index
    %c1_32 = arith.constant 1 : index
    %44 = vector.load %arg8[%c0_31, %c1, %c1_32] : memref<2x18x18xf32, #tpu.memory_space<vmem>>, vector<2x16x16xf32>
    tpu.vector_store %arg8[%c0_31, %c1, %c1_32], %1 {strides = array<i32>} : memref<2x18x18xf32, #tpu.memory_space<vmem>>, vector<2x16x16xf32>,
    %c0_33 = arith.constant 0 : index
    %c0_34 = arith.constant 0 : index
    %c0_35 = arith.constant 0 : index
    %45 = vector.load %arg8[%c0_33, %c0_34, %c0_35] : memref<2x18x18xf32, #tpu.memory_space<vmem>>, vector<2x16x18xf32>
    %c0_36 = arith.constant 0 : index
    %c1_37 = arith.constant 1 : index
    %c0_38 = arith.constant 0 : index
    %46 = vector.load %arg8[%c0_36, %c1_37, %c0_38] : memref<2x18x18xf32, #tpu.memory_space<vmem>>, vector<2x16x18xf32>
    %47 = arith.addf %45, %46 : vector<2x16x18xf32>
    %c0_39 = arith.constant 0 : index
    %c2 = arith.constant 2 : index
    %c0_40 = arith.constant 0 : index
    %48 = vector.load %arg8[%c0_39, %c2, %c0_40] : memref<2x18x18xf32, #tpu.memory_space<vmem>>, vector<2x16x18xf32>
    %49 = arith.addf %47, %48 : vector<2x16x18xf32>
    %50 = vector.extract_strided_slice %49 {offsets = [0, 0, 0], sizes = [2, 16, 16], strides = [1, 1, 1]} : vector<2x16x18xf32> to vector<2x16x16xf32>
    %51 = vector.extract_strided_slice %49 {offsets = [0, 0, 1], sizes = [2, 16, 16], strides = [1, 1, 1]} : vector<2x16x18xf32> to vector<2x16x16xf32>
    %52 = arith.addf %50, %51 : vector<2x16x16xf32>
    %53 = vector.extract_strided_slice %49 {offsets = [0, 0, 2], sizes = [2, 16, 16], strides = [1, 1, 1]} : vector<2x16x18xf32> to vector<2x16x16xf32>
    %54 = arith.addf %52, %53 : vector<2x16x16xf32>
    %cst_41 = arith.constant 0.899999976 : f32
    %55 = vector.broadcast %cst_41 : f32 to vector<2x16x16xf32>
    %56 = arith.cmpf ogt, %54, %55 : vector<2x16x16xf32>
    %57 = arith.extui %56 : vector<2x16x16xi1> to vector<2x16x16xi32>
    %58 = arith.sitofp %57 : vector<2x16x16xi32> to vector<2x16x16xf32>
    %59 = vector.shape_cast %4 : vector<16x16xf32> to vector<1x16x16xf32>
    %60 = vector.broadcast %59 : vector<1x16x16xf32> to vector<2x16x16xf32>
    %61 = arith.subf %60, %54 : vector<2x16x16xf32>
    %cst_42 = arith.constant 0.899999976 : f32
    %62 = vector.broadcast %cst_42 : f32 to vector<2x16x16xf32>
    %63 = arith.cmpf ogt, %61, %62 : vector<2x16x16xf32>
    %64 = arith.extui %63 : vector<2x16x16xi1> to vector<2x16x16xi32>
    %65 = arith.sitofp %64 : vector<2x16x16xi32> to vector<2x16x16xf32>
    %cst_43 = arith.constant 1.000000e+00 : f32
    %66 = vector.broadcast %cst_43 : f32 to vector<2x16x16xf32>
    %67 = arith.subf %66, %65 : vector<2x16x16xf32>
    %68 = arith.subf %58, %67 : vector<2x16x16xf32>
    %cst_44 = arith.constant 0.000000e+00 : f32
    %cst_45 = arith.constant 1.000000e+00 : f32
    %69 = vector.broadcast %cst_44 : f32 to vector<2x16x16xf32>
    %70 = arith.maximumf %69, %68 : vector<2x16x16xf32>
    %71 = vector.broadcast %cst_45 : f32 to vector<2x16x16xf32>
    %72 = arith.minimumf %71, %70 : vector<2x16x16xf32>
    %cst_46 = arith.constant 1.500000e+00 : f32
    %73 = vector.broadcast %cst_46 : f32 to vector<2x16x16xf32>
    %74 = arith.mulf %73, %72 : vector<2x16x16xf32>
    %cst_47 = arith.constant 0.699999988 : f32
    %75 = vector.broadcast %cst_47 : f32 to vector<2x16x16xf32>
    %76 = arith.addf %75, %74 : vector<2x16x16xf32>
    %77 = arith.mulf %76, %41 : vector<2x16x16xf32>
    %c0_48 = arith.constant 0 : index
    %c0_49 = arith.constant 0 : index
    %c0_50 = arith.constant 0 : index
    %78 = vector.load %arg3[%c0_48, %c0_49, %c0_50] : memref<2x16x16xf32, #tpu.memory_space<vmem>>, vector<2x16x16xf32>
    %79 = math.log %78 : vector<2x16x16xf32>
    %cst_51 = arith.constant -1.000000e+02 : f32
    %80 = vector.broadcast %cst_51 : f32 to vector<2x16x16xf32>
    %81 = arith.maximumf %79, %80 : vector<2x16x16xf32>
    %cst_52 = arith.constant 1.000000e+00 : f32
    %82 = vector.broadcast %cst_52 : f32 to vector<2x16x16xf32>
    %83 = arith.subf %82, %78 : vector<2x16x16xf32>
    %84 = math.log %83 : vector<2x16x16xf32>
    %cst_53 = arith.constant -1.000000e+02 : f32
    %85 = vector.broadcast %cst_53 : f32 to vector<2x16x16xf32>
    %86 = arith.maximumf %84, %85 : vector<2x16x16xf32>
    %87 = arith.mulf %1, %81 : vector<2x16x16xf32>
    %cst_54 = arith.constant 1.000000e+00 : f32
    %88 = vector.broadcast %cst_54 : f32 to vector<2x16x16xf32>
    %89 = arith.subf %88, %1 : vector<2x16x16xf32>
    %90 = arith.mulf %89, %86 : vector<2x16x16xf32>
    %91 = arith.addf %87, %90 : vector<2x16x16xf32>
    %cst_55 = arith.constant 0.000000e+00 : f32
    %92 = vector.broadcast %cst_55 : f32 to vector<2x16x16xf32>
    %93 = arith.subf %92, %91 : vector<2x16x16xf32>
    %cst_56 = arith.constant 2.000000e-01 : f32
    %94 = vector.broadcast %cst_56 : f32 to vector<2x16x16xf32>
    %95 = arith.mulf %94, %93 : vector<2x16x16xf32>
    %96 = arith.addf %77, %95 : vector<2x16x16xf32>
    %cst_57 = arith.constant 5.000000e-01 : f32
    %97 = vector.broadcast %cst_57 : f32 to vector<2x16x16xf32>
    %98 = arith.cmpf ogt, %0, %97 : vector<2x16x16xf32>
    %99 = arith.extui %98 : vector<2x16x16xi1> to vector<2x16x16xi32>
    %100 = arith.sitofp %99 : vector<2x16x16xi32> to vector<2x16x16xf32>
    %c0_58 = arith.constant 0 : index
    %c1_59 = arith.constant 1 : index
    %c1_60 = arith.constant 1 : index
    %101 = vector.load %arg8[%c0_58, %c1_59, %c1_60] : memref<2x18x18xf32, #tpu.memory_space<vmem>>, vector<2x16x16xf32>
    tpu.vector_store %arg8[%c0_58, %c1_59, %c1_60], %100 {strides = array<i32>} : memref<2x18x18xf32, #tpu.memory_space<vmem>>, vector<2x16x16xf32>,
    %c0_61 = arith.constant 0 : index
    %c0_62 = arith.constant 0 : index
    %c0_63 = arith.constant 0 : index
    %102 = vector.load %arg8[%c0_61, %c0_62, %c0_63] : memref<2x18x18xf32, #tpu.memory_space<vmem>>, vector<2x16x18xf32>
    %c0_64 = arith.constant 0 : index
    %c1_65 = arith.constant 1 : index
    %c0_66 = arith.constant 0 : index
    %103 = vector.load %arg8[%c0_64, %c1_65, %c0_66] : memref<2x18x18xf32, #tpu.memory_space<vmem>>, vector<2x16x18xf32>
    %104 = arith.addf %102, %103 : vector<2x16x18xf32>
    %c0_67 = arith.constant 0 : index
    %c2_68 = arith.constant 2 : index
    %c0_69 = arith.constant 0 : index
    %105 = vector.load %arg8[%c0_67, %c2_68, %c0_69] : memref<2x18x18xf32, #tpu.memory_space<vmem>>, vector<2x16x18xf32>
    %106 = arith.addf %104, %105 : vector<2x16x18xf32>
    %107 = vector.extract_strided_slice %106 {offsets = [0, 0, 0], sizes = [2, 16, 16], strides = [1, 1, 1]} : vector<2x16x18xf32> to vector<2x16x16xf32>
    %108 = vector.extract_strided_slice %106 {offsets = [0, 0, 1], sizes = [2, 16, 16], strides = [1, 1, 1]} : vector<2x16x18xf32> to vector<2x16x16xf32>
    %109 = arith.addf %107, %108 : vector<2x16x16xf32>
    %110 = vector.extract_strided_slice %106 {offsets = [0, 0, 2], sizes = [2, 16, 16], strides = [1, 1, 1]} : vector<2x16x18xf32> to vector<2x16x16xf32>
    %111 = arith.addf %109, %110 : vector<2x16x16xf32>
    %112 = arith.subf %111, %54 : vector<2x16x16xf32>
    %113 = math.absf %112 : vector<2x16x16xf32>
    %cst_70 = arith.constant 0.00999999977 : f32
    %114 = vector.broadcast %cst_70 : f32 to vector<2x16x16xf32>
    %115 = arith.mulf %114, %113 : vector<2x16x16xf32>
    %116 = arith.addf %96, %115 : vector<2x16x16xf32>
    %cst_71 = arith.constant dense<0.000000e+00> : vector<2x16xf32>
    %117 = vector.multi_reduction <add>, %116, %cst_71 [2] : vector<2x16x16xf32> to vector<2x16xf32>
    %cst_72 = arith.constant dense<0.000000e+00> : vector<2xf32>
    %118 = vector.multi_reduction <add>, %117, %cst_72 [1] : vector<2x16xf32> to vector<2xf32>
    %119 = vector.shape_cast %118 : vector<2xf32> to vector<2x1xf32>
    %120 = vector.extract_strided_slice %2 {offsets = [0, 0, 1], sizes = [2, 8, 7], strides = [1, 1, 1]} : vector<2x8x8xf32> to vector<2x8x7xf32>
    %121 = vector.extract_strided_slice %2 {offsets = [0, 0, 0], sizes = [2, 8, 7], strides = [1, 1, 1]} : vector<2x8x8xf32> to vector<2x8x7xf32>
    %122 = arith.subf %120, %121 : vector<2x8x7xf32>
    %123 = vector.extract_strided_slice %3 {offsets = [0, 0, 1], sizes = [2, 8, 7], strides = [1, 1, 1]} : vector<2x8x8xf32> to vector<2x8x7xf32>
    %124 = vector.extract_strided_slice %3 {offsets = [0, 0, 0], sizes = [2, 8, 7], strides = [1, 1, 1]} : vector<2x8x8xf32> to vector<2x8x7xf32>
    %125 = arith.subf %123, %124 : vector<2x8x7xf32>
    %126 = arith.mulf %122, %125 : vector<2x8x7xf32>
    %127 = math.absf %122 : vector<2x8x7xf32>
    %cst_73 = arith.constant 9.99999993E-9 : f32
    %128 = vector.broadcast %cst_73 : f32 to vector<2x8x7xf32>
    %129 = arith.maximumf %127, %128 : vector<2x8x7xf32>
    %130 = math.absf %125 : vector<2x8x7xf32>
    %cst_74 = arith.constant 9.99999993E-9 : f32
    %131 = vector.broadcast %cst_74 : f32 to vector<2x8x7xf32>
    %132 = arith.maximumf %130, %131 : vector<2x8x7xf32>
    %133 = arith.mulf %129, %132 : vector<2x8x7xf32>
    %134 = arith.divf %126, %133 : vector<2x8x7xf32>
    %cst_75 = arith.constant dense<0.000000e+00> : vector<2x8xf32>
    %135 = vector.multi_reduction <add>, %134, %cst_75 [2] : vector<2x8x7xf32> to vector<2x8xf32>
    %cst_76 = arith.constant dense<0.000000e+00> : vector<2xf32>
    %136 = vector.multi_reduction <add>, %135, %cst_76 [1] : vector<2x8xf32> to vector<2xf32>
    %137 = vector.shape_cast %136 : vector<2xf32> to vector<2x1xf32>
    %138 = vector.extract_strided_slice %2 {offsets = [0, 1, 0], sizes = [2, 7, 8], strides = [1, 1, 1]} : vector<2x8x8xf32> to vector<2x7x8xf32>
    %139 = vector.extract_strided_slice %2 {offsets = [0, 0, 0], sizes = [2, 7, 8], strides = [1, 1, 1]} : vector<2x8x8xf32> to vector<2x7x8xf32>
    %140 = arith.subf %138, %139 : vector<2x7x8xf32>
    %141 = vector.extract_strided_slice %3 {offsets = [0, 1, 0], sizes = [2, 7, 8], strides = [1, 1, 1]} : vector<2x8x8xf32> to vector<2x7x8xf32>
    %142 = vector.extract_strided_slice %3 {offsets = [0, 0, 0], sizes = [2, 7, 8], strides = [1, 1, 1]} : vector<2x8x8xf32> to vector<2x7x8xf32>
    %143 = arith.subf %141, %142 : vector<2x7x8xf32>
    %144 = arith.mulf %140, %143 : vector<2x7x8xf32>
    %145 = math.absf %140 : vector<2x7x8xf32>
    %cst_77 = arith.constant 9.99999993E-9 : f32
    %146 = vector.broadcast %cst_77 : f32 to vector<2x7x8xf32>
    %147 = arith.maximumf %145, %146 : vector<2x7x8xf32>
    %148 = math.absf %143 : vector<2x7x8xf32>
    %cst_78 = arith.constant 9.99999993E-9 : f32
    %149 = vector.broadcast %cst_78 : f32 to vector<2x7x8xf32>
    %150 = arith.maximumf %148, %149 : vector<2x7x8xf32>
    %151 = arith.mulf %147, %150 : vector<2x7x8xf32>
    %152 = arith.divf %144, %151 : vector<2x7x8xf32>
    %cst_79 = arith.constant dense<0.000000e+00> : vector<2x7xf32>
    %153 = vector.multi_reduction <add>, %152, %cst_79 [2] : vector<2x7x8xf32> to vector<2x7xf32>
    %cst_80 = arith.constant dense<0.000000e+00> : vector<2xf32>
    %154 = vector.multi_reduction <add>, %153, %cst_80 [1] : vector<2x7xf32> to vector<2xf32>
    %155 = vector.shape_cast %154 : vector<2xf32> to vector<2x1xf32>
    %156 = vector.extract_strided_slice %78 {offsets = [0, 0, 1], sizes = [2, 16, 15], strides = [1, 1, 1]} : vector<2x16x16xf32> to vector<2x16x15xf32>
    %157 = vector.extract_strided_slice %78 {offsets = [0, 0, 0], sizes = [2, 16, 15], strides = [1, 1, 1]} : vector<2x16x16xf32> to vector<2x16x15xf32>
    %158 = arith.subf %156, %157 : vector<2x16x15xf32>
    %159 = math.absf %158 : vector<2x16x15xf32>
    %160 = vector.extract_strided_slice %1 {offsets = [0, 0, 1], sizes = [2, 16, 15], strides = [1, 1, 1]} : vector<2x16x16xf32> to vector<2x16x15xf32>
    %161 = vector.extract_strided_slice %1 {offsets = [0, 0, 0], sizes = [2, 16, 15], strides = [1, 1, 1]} : vector<2x16x16xf32> to vector<2x16x15xf32>
    %162 = arith.subf %160, %161 : vector<2x16x15xf32>
    %163 = math.absf %162 : vector<2x16x15xf32>
    %cst_81 = arith.constant 1.000000e+00 : f32
    %164 = vector.broadcast %cst_81 : f32 to vector<2x16x15xf32>
    %165 = arith.subf %164, %163 : vector<2x16x15xf32>
    %166 = arith.mulf %159, %165 : vector<2x16x15xf32>
    %cst_82 = arith.constant dense<0.000000e+00> : vector<2x16xf32>
    %167 = vector.multi_reduction <add>, %166, %cst_82 [2] : vector<2x16x15xf32> to vector<2x16xf32>
    %cst_83 = arith.constant dense<0.000000e+00> : vector<2xf32>
    %168 = vector.multi_reduction <add>, %167, %cst_83 [1] : vector<2x16xf32> to vector<2xf32>
    %169 = vector.shape_cast %168 : vector<2xf32> to vector<2x1xf32>
    %170 = vector.extract_strided_slice %78 {offsets = [0, 1, 0], sizes = [2, 15, 16], strides = [1, 1, 1]} : vector<2x16x16xf32> to vector<2x15x16xf32>
    %171 = vector.extract_strided_slice %78 {offsets = [0, 0, 0], sizes = [2, 15, 16], strides = [1, 1, 1]} : vector<2x16x16xf32> to vector<2x15x16xf32>
    %172 = arith.subf %170, %171 : vector<2x15x16xf32>
    %173 = math.absf %172 : vector<2x15x16xf32>
    %174 = vector.extract_strided_slice %1 {offsets = [0, 1, 0], sizes = [2, 15, 16], strides = [1, 1, 1]} : vector<2x16x16xf32> to vector<2x15x16xf32>
    %175 = vector.extract_strided_slice %1 {offsets = [0, 0, 0], sizes = [2, 15, 16], strides = [1, 1, 1]} : vector<2x16x16xf32> to vector<2x15x16xf32>
    %176 = arith.subf %174, %175 : vector<2x15x16xf32>
    %177 = math.absf %176 : vector<2x15x16xf32>
    %cst_84 = arith.constant 1.000000e+00 : f32
    %178 = vector.broadcast %cst_84 : f32 to vector<2x15x16xf32>
    %179 = arith.subf %178, %177 : vector<2x15x16xf32>
    %180 = arith.mulf %173, %179 : vector<2x15x16xf32>
    %cst_85 = arith.constant dense<0.000000e+00> : vector<2x15xf32>
    %181 = vector.multi_reduction <add>, %180, %cst_85 [2] : vector<2x15x16xf32> to vector<2x15xf32>
    %cst_86 = arith.constant dense<0.000000e+00> : vector<2xf32>
    %182 = vector.multi_reduction <add>, %181, %cst_86 [1] : vector<2x15xf32> to vector<2xf32>
    %183 = vector.shape_cast %182 : vector<2xf32> to vector<2x1xf32>
    %184 = tpu.iota {dimensions = array<i32: 1>} : vector<2x128xi32>
    %cst_87 = arith.constant 0.000000e+00 : f32
    %185 = vector.broadcast %cst_87 : f32 to vector<2x128xf32>
    %c0_i32 = arith.constant 0 : i32
    %186 = vector.broadcast %c0_i32 : i32 to vector<2x128xi32>
    %187 = arith.cmpi eq, %184, %186 : vector<2x128xi32>
    %188 = vector.shape_cast %26 : vector<2x1xf32> to vector<2x1xf32>
    %189 = vector.broadcast %188 : vector<2x1xf32> to vector<2x128xf32>
    %190 = arith.select %187, %189, %185 : vector<2x128xi1>, vector<2x128xf32>
    %c1_i32 = arith.constant 1 : i32
    %191 = vector.broadcast %c1_i32 : i32 to vector<2x128xi32>
    %192 = arith.cmpi eq, %184, %191 : vector<2x128xi32>
    %193 = vector.shape_cast %119 : vector<2x1xf32> to vector<2x1xf32>
    %194 = vector.broadcast %193 : vector<2x1xf32> to vector<2x128xf32>
    %195 = arith.select %192, %194, %190 : vector<2x128xi1>, vector<2x128xf32>
    %c2_i32 = arith.constant 2 : i32
    %196 = vector.broadcast %c2_i32 : i32 to vector<2x128xi32>
    %197 = arith.cmpi eq, %184, %196 : vector<2x128xi32>
    %198 = vector.shape_cast %137 : vector<2x1xf32> to vector<2x1xf32>
    %199 = vector.broadcast %198 : vector<2x1xf32> to vector<2x128xf32>
    %200 = arith.select %197, %199, %195 : vector<2x128xi1>, vector<2x128xf32>
    %c3_i32 = arith.constant 3 : i32
    %201 = vector.broadcast %c3_i32 : i32 to vector<2x128xi32>
    %202 = arith.cmpi eq, %184, %201 : vector<2x128xi32>
    %203 = vector.shape_cast %155 : vector<2x1xf32> to vector<2x1xf32>
    %204 = vector.broadcast %203 : vector<2x1xf32> to vector<2x128xf32>
    %205 = arith.select %202, %204, %200 : vector<2x128xi1>, vector<2x128xf32>
    %c4_i32 = arith.constant 4 : i32
    %206 = vector.broadcast %c4_i32 : i32 to vector<2x128xi32>
    %207 = arith.cmpi eq, %184, %206 : vector<2x128xi32>
    %208 = vector.shape_cast %169 : vector<2x1xf32> to vector<2x1xf32>
    %209 = vector.broadcast %208 : vector<2x1xf32> to vector<2x128xf32>
    %210 = arith.select %207, %209, %205 : vector<2x128xi1>, vector<2x128xf32>
    %c5_i32 = arith.constant 5 : i32
    %211 = vector.broadcast %c5_i32 : i32 to vector<2x128xi32>
    %212 = arith.cmpi eq, %184, %211 : vector<2x128xi32>
    %213 = vector.shape_cast %183 : vector<2x1xf32> to vector<2x1xf32>
    %214 = vector.broadcast %213 : vector<2x1xf32> to vector<2x128xf32>
    %215 = arith.select %212, %214, %210 : vector<2x128xi1>, vector<2x128xf32>
    %c0_88 = arith.constant 0 : index
    %c0_89 = arith.constant 0 : index
    %c0_90 = arith.constant 0 : index
    %216 = vector.load %arg7[%c0_88, %c0_89, %c0_90] : memref<1x2x128xf32, #tpu.memory_space<vmem>>, vector<1x2x128xf32>
    %217 = vector.shape_cast %216 : vector<1x2x128xf32> to vector<2x128xf32>
    %218 = vector.shape_cast %215 : vector<2x128xf32> to vector<1x2x128xf32>
    tpu.vector_store %arg7[%c0_88, %c0_89, %c0_90], %218 {strides = array<i32>} : memref<1x2x128xf32, #tpu.memory_space<vmem>>, vector<1x2x128xf32>,
    return
  }
  func.func @transform_0(%arg0: i32) -> (i32, i32, i32) {
    %c0_i32 = arith.constant 0 : i32
    %c0_i32_0 = arith.constant 0 : i32
    %c0_i32_1 = arith.constant 0 : i32
    return %arg0, %c0_i32, %c0_i32_0 : i32, i32, i32
  }
  func.func @transform_1(%arg0: i32) -> (i32, i32, i32) {
    %c0_i32 = arith.constant 0 : i32
    %c0_i32_0 = arith.constant 0 : i32
    %c0_i32_1 = arith.constant 0 : i32
    return %arg0, %c0_i32, %c0_i32_0 : i32, i32, i32
  }
  func.func @transform_2(%arg0: i32) -> (i32, i32, i32) {
    %c0_i32 = arith.constant 0 : i32
    %c0_i32_0 = arith.constant 0 : i32
    %c0_i32_1 = arith.constant 0 : i32
    return %arg0, %c0_i32, %c0_i32_0 : i32, i32, i32
  }
  func.func @transform_3(%arg0: i32) -> (i32, i32, i32) {
    %c0_i32 = arith.constant 0 : i32
    %c0_i32_0 = arith.constant 0 : i32
    %c0_i32_1 = arith.constant 0 : i32
    return %arg0, %c0_i32, %c0_i32_0 : i32, i32, i32
  }
  func.func @transform_4(%arg0: i32) -> (i32, i32, i32) {
    %c0_i32 = arith.constant 0 : i32
    %c0_i32_0 = arith.constant 0 : i32
    %c0_i32_1 = arith.constant 0 : i32
    return %arg0, %c0_i32, %c0_i32_0 : i32, i32, i32
  }
  func.func @transform_5(%arg0: i32) -> (i32, i32) {
    %c0_i32 = arith.constant 0 : i32
    %c0_i32_0 = arith.constant 0 : i32
    %c0_i32_1 = arith.constant 0 : i32
    return %c0_i32, %c0_i32_0 : i32, i32
  }
  func.func @transform_6(%arg0: i32) -> (i32, i32, i32) {
    %c0_i32 = arith.constant 0 : i32
    %c0_i32_0 = arith.constant 0 : i32
    %c0_i32_1 = arith.constant 0 : i32
    return %arg0, %c0_i32, %c0_i32_0 : i32, i32, i32
  }
}

</mosaic_0001>

<bundles_post_ra>
// kernel: tpu_custom_call.1
= control target key start
LH: loop header
LB: loop body
LE: loop exit
PB: predicated region body
PF: predicated region fallthrough
CT: control target
= control target key end

     0   :  { %11 = vsyncpa [#allocation4], 0  ;;  %s1754_s0 = inlined_call_operand.hbm [shape: f32[2,16,16], index: 0, kind: input, shape index: {}]   ;;  %s1755_s1 = inlined_call_operand.hbm [shape: f32[2,16,16], index: 1, kind: input, shape index: {}]   ;;  %s1756_s2 = inlined_call_operand.hbm [shape: f32[2,16,16], index: 2, kind: input, shape index: {}]   ;;  %s1757_s3 = inlined_call_operand.hbm [shape: f32[2,8,8], index: 3, kind: input, shape index: {}]   ;;  %s1758_s4 = inlined_call_operand.hbm [shape: f32[2,8,8], index: 4, kind: input, shape index: {}]   ;;  %s1759_s5 = inlined_call_operand.vmem [shape: f32[16,16], index: 5, kind: input, shape index: {}]   ;;  %s1760_s6 = inlined_call_operand.hbm [shape: f32[1,2,128], index: 6, kind: output, shape index: {}]  }
   0x1   :  { %12 = vsyncpa [#allocation7], 0 }
   0x2   :  { %13 = vsyncpa [#allocation10], 0 }
   0x3   :  { %14 = vsyncpa [#allocation5], 0  ;;  %s1186_s21 = smov [#allocation6]   ;;  %s1187_s23 = smov [#allocation9]  }
   0x4   :  { %s32_s22 = sshll.u32 %s1186_s21, 4  ;;  %s56_s24 = sshll.u32 %s1187_s23, 4  ;;  %s33_s22 = int_to_ptr.vmem [resolvable:$true] %s32_s22  ;;  %s1233_s24 = int_to_ptr.vmem [resolvable:$true] %s56_s24 }
   0x5   :  { %s1046_s27 = scalar_lea.hbm %s1755_s1, 512 }
   0x6   :  { %p1047_p0 = scmp.ne.s32.totalorder %s1755_s1, %s1046_s27  ;;  %p1050_p1 = scmp.lt.u32.totalorder %s1046_s27, %s1755_s1 }
   0x8   :  { %p1052_p2 = pnand %p1050_p1, %p1047_p0 }
   0xa   :  { %1055 = shalt.err (!%p1052_p2)
}
   0xb   :  { %s1056_s8 = scalar_lea.vmem %s33_s22, 512  ;;  %p1061_p4 = scmp.lt.s32.totalorder %s33_s22, %s33_s22 }
   0xc   :  { %p1057_p3 = scmp.ne.s32.totalorder %s33_s22, %s1056_s8  ;;  %p1062_p5 = scmp.lt.s32.totalorder %s1056_s8, %s1056_s8 }
   0xe   :  { %p1063_p6 = por %p1062_p5, %p1061_p4 }
  0x10   :  { %p1064_p7 = pnand %p1063_p6, %p1057_p3 }
  0x12   :  { %1067 = shalt.err (!%p1064_p7)
}
  0x13   :  { %s1188_s9 = smov 128   ;;  %s1189_s10 = smov 8  }
  0x14   :  { %38 = dma.hbm_to_vmem [thread:$0]  %s1755_s1, 512, %s33_s22, [#allocation7], %s1188_s9, %s1188_s9, %s1189_s10  }
  0x15   :  { %s1068_s15 = scalar_lea.hbm %s1757_s3, 256 }
  0x16   :  { %p1069_p8 = scmp.ne.s32.totalorder %s1757_s3, %s1068_s15  ;;  %p1072_p9 = scmp.lt.u32.totalorder %s1068_s15, %s1757_s3 }
  0x18   :  { %p1074_p10 = pnand %p1072_p9, %p1069_p8 }
  0x1a   :  { %1077 = shalt.err (!%p1074_p10)
}
  0x1b   :  { %s1078_s20 = scalar_lea.vmem %s1233_s24, 256  ;;  %p1083_p12 = scmp.lt.s32.totalorder %s1233_s24, %s1233_s24 }
  0x1c   :  { %p1079_p11 = scmp.ne.s32.totalorder %s1233_s24, %s1078_s20  ;;  %p1084_p13 = scmp.lt.s32.totalorder %s1078_s20, %s1078_s20 }
  0x1e   :  { %p1085_p0 = por %p1084_p13, %p1083_p12 }
  0x20   :  { %p1086_p1 = pnand %p1085_p0, %p1079_p11 }
  0x22   :  { %1089 = shalt.err (!%p1086_p1)
}
  0x23   :  { %62 = dma.hbm_to_vmem [thread:$0]  %s1757_s3, 256, %s1233_s24, [#allocation10], %s1188_s9, %s1188_s9, %s1189_s10  }
  0x24   :  { %s1190_s22 = smov [#allocation3]   ;;  %s1191_s25 = smov [#allocation8]  }
  0x25   :  { %s20_s23 = sshll.u32 %s1190_s22, 4  ;;  %s44_s26 = sshll.u32 %s1191_s25, 4  ;;  %s21_s23 = int_to_ptr.vmem [resolvable:$true] %s20_s23  ;;  %s1270_s26 = int_to_ptr.vmem [resolvable:$true] %s44_s26 }
  0x26   :  { %s1090_s29 = scalar_lea.hbm %s1754_s0, 512 }
  0x27   :  { %p1091_p2 = scmp.ne.s32.totalorder %s1754_s0, %s1090_s29  ;;  %p1094_p3 = scmp.lt.u32.totalorder %s1090_s29, %s1754_s0 }
  0x29   :  { %p1096_p4 = pnand %p1094_p3, %p1091_p2 }
  0x2b   :  { %1099 = shalt.err (!%p1096_p4)
}
  0x2c   :  { %s1100_s3 = scalar_lea.vmem %s21_s23, 512  ;;  %p1105_p6 = scmp.lt.s32.totalorder %s21_s23, %s21_s23 }
  0x2d   :  { %p1101_p5 = scmp.ne.s32.totalorder %s21_s23, %s1100_s3  ;;  %p1106_p7 = scmp.lt.s32.totalorder %s1100_s3, %s1100_s3 }
  0x2f   :  { %p1107_p8 = por %p1106_p7, %p1105_p6 }
  0x31   :  { %p1108_p9 = pnand %p1107_p8, %p1101_p5 }
  0x33   :  { %1111 = shalt.err (!%p1108_p9)
}
  0x34   :  { %26 = dma.hbm_to_vmem [thread:$0]  %s1754_s0, 512, %s21_s23, [#allocation4], %s1188_s9, %s1188_s9, %s1189_s10  }
  0x35   :  { %s1112_s15 = scalar_lea.hbm %s1756_s2, 512 }
  0x36   :  { %p1113_p10 = scmp.ne.s32.totalorder %s1756_s2, %s1112_s15  ;;  %p1116_p11 = scmp.lt.u32.totalorder %s1112_s15, %s1756_s2 }
  0x38   :  { %p1118_p12 = pnand %p1116_p11, %p1113_p10 }
  0x3a   :  { %1121 = shalt.err (!%p1118_p12)
}
  0x3b   :  { %s1122_s20 = scalar_lea.vmem %s1270_s26, 512  ;;  %p1127_p0 = scmp.lt.s32.totalorder %s1270_s26, %s1270_s26 }
  0x3c   :  { %p1123_p13 = scmp.ne.s32.totalorder %s1270_s26, %s1122_s20  ;;  %p1128_p1 = scmp.lt.s32.totalorder %s1122_s20, %s1122_s20 }
  0x3e   :  { %p1129_p2 = por %p1128_p1, %p1127_p0 }
  0x40   :  { %p1130_p3 = pnand %p1129_p2, %p1123_p13 }
  0x42   :  { %1133 = shalt.err (!%p1130_p3)
}
  0x43   :  { %50 = dma.hbm_to_vmem [thread:$0]  %s1756_s2, 512, %s1270_s26, [#allocation7], %s1188_s9, %s1188_s9, %s1189_s10  }
  0x44   :  { %s1192_s21 = smov [#allocation11]   ;;  %s1134_s27 = scalar_lea.hbm %s1758_s4, 256 }
  0x45   :  { %s68_s22 = sshll.u32 %s1192_s21, 4  ;;  %p1135_p4 = scmp.ne.s32.totalorder %s1758_s4, %s1134_s27  ;;  %s69_s22 = int_to_ptr.vmem [resolvable:$true] %s68_s22 }
  0x46   :  { %p1138_p5 = scmp.lt.u32.totalorder %s1134_s27, %s1758_s4 }
  0x48   :  { %p1140_p6 = pnand %p1138_p5, %p1135_p4 }
  0x4a   :  { %1143 = shalt.err (!%p1140_p6)
}
  0x4b   :  { %s1144_s8 = scalar_lea.vmem %s69_s22, 256  ;;  %p1149_p8 = scmp.lt.s32.totalorder %s69_s22, %s69_s22 }
  0x4c   :  { %p1145_p7 = scmp.ne.s32.totalorder %s69_s22, %s1144_s8  ;;  %p1150_p9 = scmp.lt.s32.totalorder %s1144_s8, %s1144_s8 }
  0x4e   :  { %p1151_p10 = por %p1150_p9, %p1149_p8 }
  0x50   :  { %p1152_p11 = pnand %p1151_p10, %p1145_p7 }
  0x52   :  { %1155 = shalt.err (!%p1152_p11)
}
  0x53   :  { %74 = dma.hbm_to_vmem [thread:$0]  %s1758_s4, 256, %s69_s22, [#allocation10], %s1188_s9, %s1188_s9, %s1189_s10  }
  0x54   :  { %1178 = dma.done.wait [#allocation4], 512  }
  0x55   :  { %1179 = vsyncadd [#allocation4], 4294966784 }
  0x56   :  { %1180 = dma.done.wait [#allocation7], 1024  }
  0x57   :  { %1181 = vsyncadd [#allocation7], 4294966272 }
  0x58   :  { %1182 = dma.done.wait [#allocation10], 512  }
  0x59   :  { %1183 = vsyncadd [#allocation10], 4294966784  ;;  %vm297_vm0 = vcmask 146432   ;;  %v1193_v0 = vmov 0.0   ;;  %vm300_vm1 = vcmask 140288   ;;  %v1328_v1 = vld [vmem:[#allocation6 + $0x10] sm:$0xff] }
  0x5a   :  { %302 = vst.msk [vmem:[#allocation2 + $0x18] sm:$0xff] %vm297_vm0, %v1193_v0  ;;  %303 = vst.msk [vmem:[#allocation2 + $0x20] sm:$0xff] %vm297_vm0, %v1193_v0  ;;  %v1330_v2 = vld [vmem:[#allocation6] sm:$0xff]  ;;  %s1194_s4 = smov 1   ;;  %v1336_v3 = vld [vmem:[#allocation6 + $0x18] sm:$0xff]  ;;  %vm110_vm6 = vcmask 130048  }
  0x5b   :  { %298 = vst.msk [vmem:[#allocation2] sm:$0xff] %vm297_vm0, %v1193_v0  ;;  %299 = vst.msk [vmem:[#allocation2 + $0x8] sm:$0xff] %vm297_vm0, %v1193_v0  ;;  %313 = vrot.lane.b32.xlu1 %v1328_v1, %s1194_s4  ;;  %309 = vrot.lane.b32.xlu0 %v1330_v2, %s1194_s4  ;;  %v1338_v4 = vld [vmem:[#allocation3 + $0x10] sm:$0xff]  ;;  %v1340_v5 = vld [vmem:[#allocation3 + $0x18] sm:$0xff]  ;;  %vm321_vm7 = vcmask 138248   ;;  %s1195_s9 = smov 127  }
  0x5c   :  { %304 = vst.msk [vmem:[#allocation2 + $0x28] sm:$0x3] %vm300_vm1, %v1193_v0  ;;  %301 = vst.msk [vmem:[#allocation2 + $0x10] sm:$0x3] %vm300_vm1, %v1193_v0  ;;  %v1342_v6 = vld [vmem:[#allocation6 + $0x8] sm:$0xff]  ;;  %vm496_vm2 = vcmp.gt.f32.partialorder %v1338_v4, 0.5 }
  0x5d   :  { %vm497_vm3 = vcmp.gt.f32.partialorder %v1340_v5, 0.5  ;;  %v1346_v7 = vld [vmem:[#allocation3] sm:$0xff]  ;;  %v1348_v8 = vld [vmem:[#allocation3 + $0x8] sm:$0xff]  ;;  %v980_v9 = vsel %vm496_vm2, 1.0, %v1193_v0  ;;  %v1370_v17 = vld [vmem:[#allocation11 + $0x8] sm:$0xff]  ;;  %s1196_s10 = smov 126  }
  0x5e   :  { %v981_v10 = vsel %vm497_vm3, 1.0, %v1193_v0  ;;  %vm494_vm4 = vcmp.gt.f32.partialorder %v1346_v7, 0.5  ;;  %vm495_vm5 = vcmp.gt.f32.partialorder %v1348_v8, 0.5  ;;  %v1362_v15 = vld [vmem:[#allocation9 + $0x8] sm:$0xff]  ;;  %v1364_v16 = vld [vmem:[#allocation9] sm:$0xff]  ;;  %v1372_v18 = vld [vmem:[#allocation11] sm:$0xff]  ;;  %v158_v23 = vmul.f32 %v1346_v7, %v1346_v7 }
  0x5f   :  { %v978_v11 = vsel %vm494_vm4, 1.0, %v1193_v0  ;;  %v979_v12 = vsel %vm495_vm5, 1.0, %v1193_v0  ;;  %315 = vrot.lane.b32.xlu1 %v1336_v3, %s1194_s4  ;;  %311 = vrot.lane.b32.xlu0 %v1342_v6, %s1194_s4  ;;  %v999_v13 = vpack.i.bf16 %v981_v10, %v980_v9  ;;  %v1378_v19 = vld [vmem:[#allocation8 + $0x8] sm:$0xff]  ;;  %v1380_v20 = vld [vmem:[#allocation8] sm:$0xff]  ;;  %v1386_v21 = vld [vmem:[#allocation8 + $0x18] sm:$0xff]  ;;  %vm852_vm8 = vcmask 1040384  }
  0x60   :  { %v994_v14 = vpack.i.bf16 %v979_v12, %v978_v11  ;;  %v1388_v22 = vld [vmem:[#allocation8 + $0x10] sm:$0xff]  ;;  %v162_v24 = vsel %vm110_vm6, %v158_v23, 0.0  ;;  %vm732_vm9 = vcmask 64513   ;;  %vm897_vm10 = vcmask 130049  }
  0x61   :  { %vm812_vm11 = vcmask 121856   ;;  %vm681_vm4 = vcmask 56320   ;;  %vm138_vm5 = vcmask 130112  }
  0x63   :  { %1000 = vrot.lane.b32.xlu1 %v999_v13, %s1194_s4  ;;  %995 = vrot.lane.b32.xlu0 %v994_v14, %s1194_s4 }
  0x67   :  { %641 = vrot.lane.b32.xlu1 %v1362_v15, %s1194_s4  ;;  %639 = vrot.lane.b32.xlu0 %v1364_v16, %s1194_s4 }
  0x6b   :  { %651 = vrot.lane.b32.xlu1 %v1370_v17, %s1194_s4  ;;  %649 = vrot.lane.b32.xlu0 %v1372_v18, %s1194_s4 }
  0x6f   :  { %762 = vrot.lane.b32.xlu1 %v1378_v19, %s1194_s4  ;;  %760 = vrot.lane.b32.xlu0 %v1380_v20, %s1194_s4 }
  0x73   :  { %766 = vrot.lane.b32.xlu1 %v1386_v21, %s1194_s4  ;;  %764 = vrot.lane.b32.xlu0 %v1388_v22, %s1194_s4 }
  0x92   :  { %163 = vadd.xlane.f32.xlu0 %v162_v24 }
  0xcd   :  { %v1397_v25 = vpop.permute.xlu1 %313  ;;  %v310_v26 = vpop.permute.xlu0 %309 }
  0xce   :  { %324 = vst.msk [vmem:[#allocation2 + $0x19] sm:$0xff] %vm321_vm7, %v1397_v25  ;;  %322 = vst.msk [vmem:[#allocation2 + $0x1] sm:$0xff] %vm321_vm7, %v310_v26  ;;  %v780_v48 = vsub.f32 %v1330_v2, %v310_v26  ;;  %v782_v11 = vsub.f32 %v1328_v1, %v1397_v25 }
  0xd0   :  { %v784_v59 = vand.u32 2147483647, %v780_v48 }
  0xd1   :  { %v316_v27 = vpop.permute.xlu1 %315  ;;  %v312_v28 = vpop.permute.xlu0 %311 }
  0xd2   :  { %325 = vst.msk [vmem:[#allocation2 + $0x21] sm:$0xff] %vm321_vm7, %v316_v27  ;;  %323 = vst.msk [vmem:[#allocation2 + $0x9] sm:$0xff] %vm321_vm7, %v312_v28  ;;  %v781_v49 = vsub.f32 %v1342_v6, %v312_v28  ;;  %v783_v60 = vsub.f32 %v1336_v3, %v316_v27 }
  0xd4   :  { %v785_v61 = vand.u32 2147483647, %v781_v49  ;;  %v787_v27 = vand.u32 2147483647, %v783_v60 }
  0xd5   :  { %v1001_v29 = vpop.permute.xlu1 %1000  ;;  %v996_v30 = vpop.permute.xlu0 %995  ;;  %v1404_v33 = vld [vmem:[#allocation2] sm:$0xff]  ;;  %v1414_v40 = vld [vmem:[#allocation2 + $0x18] sm:$0xff] }
  0xd6   :  { %v998_v31 = vunpack.i.h.bf16 %v996_v30  ;;  %v997_v32 = vunpack.i.l.bf16 %v996_v30  ;;  %v1406_v34 = vld [vmem:[#allocation2 + $0x1] sm:$0xff]  ;;  %v1003_v41 = vunpack.i.h.bf16 %v1001_v29  ;;  %v1002_v42 = vunpack.i.l.bf16 %v1001_v29  ;;  %v332_v51 = vld [vmem:[#allocation2 + $0x19] sm:$0xff] }
  0xd7   :  { %v788_v30 = vsub.f32 1.0, %v784_v59 }
  0xd9   :  { %v642_v35 = vpop.permute.xlu1 %641  ;;  %v640_v36 = vpop.permute.xlu0 %639  ;;  %v1408_v37 = vld [vmem:[#allocation2 + $0x8] sm:$0xff]  ;;  %v1420_v46 = vld [vmem:[#allocation2 + $0x20] sm:$0xff] }
  0xda   :  { %v1410_v38 = vld [vmem:[#allocation2 + $0x9] sm:$0xff]  ;;  %v646_v43 = vsub.f32 %v1362_v15, %v642_v35  ;;  %v645_v44 = vsub.f32 %v1364_v16, %v640_v36  ;;  %v333_v47 = vld [vmem:[#allocation2 + $0x21] sm:$0xff] }
  0xdb   :  { %v1412_v39 = vld [vmem:[#allocation2 + $0xa] sm:$0xff]  ;;  %v1418_v45 = vld [vmem:[#allocation2 + $0x2] sm:$0xff]  ;;  %v1428_v52 = vld [vmem:[#allocation2 + $0x1a] sm:$0xff]  ;;  %v335_v59 = vadd.f32 %v1410_v38, %v1408_v37 }
  0xdc   :  { %522 = vst.msk [vmem:[#allocation2 + $0x1] sm:$0xff] %vm321_vm7, %v997_v32  ;;  %523 = vst.msk [vmem:[#allocation2 + $0x9] sm:$0xff] %vm321_vm7, %v998_v31  ;;  %v1426_v50 = vld [vmem:[#allocation2 + $0x22] sm:$0xff]  ;;  %v660_v53 = vand.u32 2147483647, %v646_v43  ;;  %v789_v31 = vsub.f32 1.0, %v785_v61  ;;  %v334_v61 = vadd.f32 %v1406_v34, %v1404_v33  ;;  %v336_v33 = vadd.f32 %v332_v51, %v1414_v40 }
  0xdd   :  { %524 = vst.msk [vmem:[#allocation2 + $0x19] sm:$0xff] %vm321_vm7, %v1002_v42  ;;  %525 = vst.msk [vmem:[#allocation2 + $0x21] sm:$0xff] %vm321_vm7, %v1003_v41  ;;  %v659_v54 = vand.u32 2147483647, %v645_v44  ;;  %v652_v55 = vpop.permute.xlu1 %651  ;;  %v650_v56 = vpop.permute.xlu0 %649  ;;  %v786_v42 = vand.u32 2147483647, %v782_v11 }
  0xde   :  { %v656_v57 = vsub.f32 %v1370_v17, %v652_v55  ;;  %v655_v58 = vsub.f32 %v1372_v18, %v650_v56  ;;  %v662_v12 = vmax.f32 %v660_v53, 1e-08  ;;  %v1454_v11 = vadd.f32 %v1418_v45, %v334_v61 }
  0xdf   :  { %v661_v13 = vmax.f32 %v659_v54, 1e-08  ;;  %v791_v54 = vsub.f32 1.0, %v787_v27  ;;  %v790_v56 = vsub.f32 1.0, %v786_v42  ;;  %v161_v42 = vmul.f32 %v1340_v5, %v1340_v5 }
  0xe0   :  { %v658_v62 = vmul.f32 %v656_v57, %v646_v43  ;;  %v664_v63 = vand.u32 2147483647, %v656_v57  ;;  %v657_v9 = vmul.f32 %v655_v58, %v645_v44  ;;  %v663_v10 = vand.u32 2147483647, %v655_v58 }
  0xe1   :  { %v763_v14 = vpop.permute.xlu1 %762  ;;  %v761_v23 = vpop.permute.xlu0 %760  ;;  %vm149_vm7 = vcmask 1041409  }
  0xe2   :  { %v666_v24 = vmax.f32 %v664_v63, 1e-08  ;;  %v665_v26 = vmax.f32 %v663_v10, 1e-08  ;;  %v773_v28 = vsub.f32 %v1378_v19, %v763_v14  ;;  %v772_v29 = vsub.f32 %v1380_v20, %v761_v23 }
  0xe3   :  { %v1450_v63 = vadd.f32 %v1412_v39, %v335_v59  ;;  %v337_v10 = vadd.f32 %v333_v47, %v1420_v46  ;;  %v1465_v46 = vadd.f32 %v1428_v52, %v336_v33  ;;  %v527_v45 = vld [vmem:[#allocation2 + $0x8] sm:$0xff]  ;;  %v526_v40 = vld [vmem:[#allocation2] sm:$0xff] }
  0xe4   :  { %v668_v32 = vmul.f32 %v666_v24, %v662_v12  ;;  %v667_v35 = vmul.f32 %v665_v26, %v661_v13  ;;  %v777_v36 = vand.u32 2147483647, %v773_v28  ;;  %v776_v41 = vand.u32 2147483647, %v772_v29  ;;  %v531_v47 = vld [vmem:[#allocation2 + $0x9] sm:$0xff]  ;;  %v530_v51 = vld [vmem:[#allocation2 + $0x1] sm:$0xff] }
  0xe5   :  { %v767_v43 = vpop.permute.xlu1 %766  ;;  %v765_v25 = vpop.permute.xlu0 %764  ;;  %v1462_v38 = vadd.f32 %v1426_v50, %v337_v10  ;;  %v535_v50 = vadd.f32 %v531_v47, %v527_v45  ;;  %v533_v52 = vld [vmem:[#allocation2 + $0x21] sm:$0xff]  ;;  %v528_v13 = vld [vmem:[#allocation2 + $0x18] sm:$0xff]  ;;  %v539_v23 = vld [vmem:[#allocation2 + $0xa] sm:$0xff]  ;;  %v202_v45 = vmul.f32 %v1342_v6, %v1342_v6 }
  0xe6   :  { %1004 = vrcp.f32 %v668_v32  ;;  %v793_v44 = vmul.f32 %v789_v31, %v777_v36  ;;  %v792_v48 = vmul.f32 %v788_v30, %v776_v41  ;;  %v775_v49 = vsub.f32 %v1386_v21, %v767_v43  ;;  %v532_v14 = vld [vmem:[#allocation2 + $0x19] sm:$0xff]  ;;  %v538_v26 = vld [vmem:[#allocation2 + $0x2] sm:$0xff] }
  0xe7   :  { %1006 = vrcp.f32 %v667_v35  ;;  %v774_v53 = vsub.f32 %v1388_v22, %v765_v25  ;;  %v1475_v24 = vadd.f32 %v539_v23, %v535_v50  ;;  %v536_v30 = vadd.f32 %v532_v14, %v528_v13  ;;  %v541_v27 = vld [vmem:[#allocation2 + $0x22] sm:$0xff]  ;;  %v540_v32 = vld [vmem:[#allocation2 + $0x1a] sm:$0xff] }
  0xe8   :  { %v779_v55 = vand.u32 2147483647, %v775_v49  ;;  %802 = vrot.lane.b32.xlu1 %v793_v44, %s1195_s9  ;;  %800 = vrot.lane.b32.xlu0 %v792_v48, %s1195_s9  ;;  %v160_v36 = vmul.f32 %v1338_v4, %v1338_v4  ;;  %v159_v43 = vmul.f32 %v1348_v8, %v1348_v8  ;;  %v171_v25 = vsel %vm110_vm6, %v161_v42, 0.0 }
  0xe9   :  { %v778_v57 = vand.u32 2147483647, %v774_v53  ;;  %v1485_v35 = vadd.f32 %v540_v32, %v536_v30  ;;  %v705_v48 = vrot.slane %v1362_v15, 7  ;;  %v711_v49 = vrot.slane %v1370_v17, 7 }
  0xea   :  { %v795_v58 = vmul.f32 %v791_v54, %v779_v55  ;;  %v168_v41 = vsel %vm110_vm6, %v160_v36, 0.0  ;;  %v165_v44 = vsel %vm110_vm6, %v159_v43, 0.0  ;;  %v704_v53 = vrot.slane %v1364_v16, 7 }
  0xeb   :  { %v794_v60 = vmul.f32 %v790_v56, %v778_v57  ;;  %v710_v54 = vrot.slane %v1372_v18, 7  ;;  %v709_v55 = vsub.f32 %v1362_v15, %v705_v48  ;;  %v715_v56 = vsub.f32 %v1370_v17, %v711_v49 }
  0xec   :  { %806 = vrot.lane.b32.xlu1 %v795_v58, %s1195_s9  ;;  %v708_v57 = vsub.f32 %v1364_v16, %v704_v53  ;;  %v201_v15 = vmul.f32 %v1330_v2, %v1330_v2  ;;  %v871_v16 = vrot.slane %v1330_v2, 7  ;;  %v208_v47 = vsel %vm110_vm6, %v202_v45, 0.0 }
  0xed   :  { %804 = vrot.lane.b32.xlu0 %v794_v60, %s1195_s9  ;;  %v714_v58 = vsub.f32 %v1372_v18, %v710_v54  ;;  %v719_v59 = vand.u32 2147483647, %v709_v55  ;;  %v723_v60 = vand.u32 2147483647, %v715_v56  ;;  %v872_v18 = vrot.slane %v1342_v6, 7 }
  0xee   :  { %v718_v61 = vand.u32 2147483647, %v708_v57  ;;  %v203_v50 = vmul.f32 %v1328_v1, %v1328_v1  ;;  %v107_v13 = vmul.f32 %v1342_v6, %v1348_v8  ;;  %v106_v14 = vmul.f32 %v1330_v2, %v1346_v7 }
  0xef   :  { %v722_v10 = vand.u32 2147483647, %v714_v58  ;;  %v108_v42 = vmul.f32 %v1328_v1, %v1338_v4  ;;  %v717_v48 = vmul.f32 %v715_v56, %v709_v55  ;;  %v716_v49 = vmul.f32 %v714_v58, %v708_v57 }
  0xf0   :  { %v1005_v12 = vpop.eup %1004  ;;  %352 = vrot.lane.b32.xlu1 %v1450_v63, %s1195_s9  ;;  %v720_v33 = vmax.f32 %v718_v61, 1e-08  ;;  %v114_v32 = vsel %vm110_vm6, %v107_v13, 0.0  ;;  %v111_v36 = vsel %vm110_vm6, %v106_v14, 0.0 }
  0xf1   :  { %v1007_v37 = vpop.eup %1006  ;;  %350 = vrot.lane.b32.xlu0 %v1454_v11, %s1195_s9  ;;  %v672_v34 = vmul.f32 %v1005_v12, %v658_v62  ;;  %v534_v62 = vadd.f32 %v530_v51, %v526_v40  ;;  %v721_v12 = vmax.f32 %v719_v59, 1e-08  ;;  %v205_v40 = vsel %vm110_vm6, %v201_v15, 0.0 }
  0xf2   :  { %v670_v39 = vmul.f32 %v1007_v37, %v657_v9  ;;  %v529_v9 = vld [vmem:[#allocation2 + $0x20] sm:$0xff]  ;;  %v725_v37 = vmax.f32 %v723_v60, 1e-08  ;;  %v204_v51 = vmul.f32 %v1336_v3, %v1336_v3  ;;  %v117_v61 = vsel %vm110_vm6, %v108_v42, 0.0 }
  0xf3   :  { %v537_v28 = vadd.f32 %v533_v52, %v529_v9  ;;  %v1477_v29 = vadd.f32 %v538_v26, %v534_v62  ;;  %v853_v62 = vrot.slane %v1380_v20, 7  ;;  %v854_v9 = vrot.slane %v1378_v19, 7 }
  0xf4   :  { %356 = vrot.lane.b32.xlu1 %v1462_v38, %s1195_s9  ;;  %v873_v52 = vsel %vm852_vm8, %v871_v16, %v872_v18  ;;  %v214_v26 = vsel %vm110_vm6, %v204_v51, 0.0 }
  0xf5   :  { %354 = vrot.lane.b32.xlu0 %v1465_v46, %s1195_s9  ;;  %v1483_v31 = vadd.f32 %v541_v27, %v537_v28  ;;  %v882_v23 = vsub.f32 %v1342_v6, %v873_v52  ;;  %v211_v28 = vsel %vm110_vm6, %v203_v50, 0.0  ;;  %v855_v30 = vsel %vm852_vm8, %v853_v62, %v854_v9 }
  0xf6   :  { %v881_v27 = vsub.f32 %v1330_v2, %v871_v16  ;;  %v864_v43 = vsub.f32 %v1378_v19, %v855_v30  ;;  %v863_v53 = vsub.f32 %v1380_v20, %v853_v62  ;;  %v454_v52 = vsub.f32 1.0, %v1380_v20 }
  0xf7   :  { %v262_v30 = vsub.f32 1.0, %v1348_v8 }
  0xf8   :  { %368 = vrot.lane.b32.xlu1 %v1450_v63, %s1196_s10  ;;  %v885_v54 = vand.u32 2147483647, %v881_v27 }
  0xf9   :  { %366 = vrot.lane.b32.xlu0 %v1454_v11, %s1196_s10 }
  0xfc   :  { %372 = vrot.lane.b32.xlu1 %v1462_v38, %s1196_s10 }
  0xfd   :  { %370 = vrot.lane.b32.xlu0 %v1465_v46, %s1196_s10 }
 0x100   :  { %552 = vrot.lane.b32.xlu1 %v1475_v24, %s1195_s9 }
 0x101   :  { %550 = vrot.lane.b32.xlu0 %v1477_v29, %s1195_s9 }
 0x104   :  { %556 = vrot.lane.b32.xlu1 %v1483_v31, %s1195_s9 }
 0x105   :  { %554 = vrot.lane.b32.xlu0 %v1485_v35, %s1195_s9 }
 0x108   :  { %568 = vrot.lane.b32.xlu1 %v1475_v24, %s1196_s10 }
 0x109   :  { %566 = vrot.lane.b32.xlu0 %v1477_v29, %s1196_s10 }
 0x10c   :  { %572 = vrot.lane.b32.xlu1 %v1483_v31, %s1196_s10 }
 0x10d   :  { %570 = vrot.lane.b32.xlu0 %v1485_v35, %s1196_s10 }
 0x11f   :  { %v1548_v45 = vpop.xlane.xlu0 %163 }
 0x12c   :  { %169 = vadd.xlane.f32.xlu0 %v168_v41  ;;  %v109_v41 = vmul.f32 %v1336_v3, %v1340_v5 }
 0x12e   :  { %v120_v60 = vsel %vm110_vm6, %v109_v41, 0.0 }
 0x130   :  { %172 = vadd.xlane.f32.xlu0 %v171_v25  ;;  %166 = vadd.xlane.f32.xlu1 %v165_v44  ;;  %v886_v25 = vand.u32 2147483647, %v882_v23  ;;  %v261_v23 = vsub.f32 1.0, %v1346_v7 }
 0x141   :  { %677 = vrot.lane.b32.xlu1 %v672_v34, %s1195_s9  ;;  %v724_v34 = vmax.f32 %v722_v10, 1e-08  ;;  %v868_v10 = vand.u32 2147483647, %v864_v43 }
 0x143   :  { %v726_v17 = vmul.f32 %v724_v34, %v720_v33  ;;  %v867_v34 = vand.u32 2147483647, %v863_v53 }
 0x146   :  { %675 = vrot.lane.b32.xlu0 %v670_v39, %s1195_s9  ;;  %v727_v39 = vmul.f32 %v725_v37, %v721_v12  ;;  %v890_v12 = vsub.f32 1.0, %v886_v25 }
 0x148   :  { %1008 = vrcp.f32 %v727_v39  ;;  %v889_v39 = vsub.f32 1.0, %v885_v54  ;;  %v894_v57 = vmul.f32 %v890_v12, %v868_v10  ;;  %v281_v12 = vsub.f32 1.0, %v1330_v2 }
 0x149   :  { %1010 = vrcp.f32 %v726_v17 }
 0x14a   :  { %v893_v58 = vmul.f32 %v889_v39, %v867_v34  ;;  %v901_v15 = vsel %vm110_vm6, %v894_v57, 0.0  ;;  %1012 = vlog2.f32 %v1380_v20  ;;  %v456_v20 = vsub.f32 1.0, %v1388_v22 }
 0x14b   :  { %1014 = vlog2.f32 %v454_v52  ;;  %v264_v57 = vsub.f32 1.0, %v1340_v5 }
 0x14c   :  { %v898_v17 = vsel %vm897_vm10, %v893_v58, 0.0  ;;  %1016 = vlog2.f32 %v1346_v7 }
 0x14d   :  { %1018 = vlog2.f32 %v261_v23 }
 0x14e   :  { %1020 = vlog2.f32 %v1348_v8  ;;  %v105_v8 = vld [vmem:[%s1759_s5 + $0x8] sm:$0xff] }
 0x14f   :  { %1022 = vlog2.f32 %v262_v30 }
 0x150   :  { %1024 = vlog2.f32 %v1378_v19 }
 0x152   :  { %v1009_v44 = vpop.eup %1008 }
 0x153   :  { %v1011_v59 = vpop.eup %1010  ;;  %v731_v37 = vmul.f32 %v1009_v44, %v717_v48 }
 0x154   :  { %v729_v33 = vmul.f32 %v1011_v59, %v716_v49  ;;  %v1013_v27 = vpop.eup %1012 }
 0x155   :  { %v736_v55 = vsel %vm732_vm9, %v731_v37, 0.0  ;;  %v443_v48 = vmul.f32 0.6931472, %v1013_v27 }
 0x156   :  { %v733_v56 = vsel %vm732_vm9, %v729_v33, 0.0  ;;  %vm700_vm9 = vcmask 58368  }
 0x157   :  { %v450_v37 = vmax.f32 %v443_v48, -100.0 }
 0x15a   :  { %v803_v16 = vpop.permute.xlu1 %802  ;;  %v801_v18 = vpop.permute.xlu0 %800 }
 0x15e   :  { %v807_v51 = vpop.permute.xlu1 %806 }
 0x15f   :  { %v805_v50 = vpop.permute.xlu0 %804  ;;  %v822_v62 = vsel %vm812_vm11, %v807_v51, 0.0 }
 0x160   :  { %v819_v9 = vsel %vm812_vm11, %v805_v50, 0.0 }
 0x162   :  { %v353_v13 = vpop.permute.xlu1 %352 }
 0x163   :  { %v351_v14 = vpop.permute.xlu0 %350  ;;  %v363_v25 = vadd.f32 %v353_v13, %v1450_v63  ;;  %v104_v63 = vld [vmem:[%s1759_s5] sm:$0xff]  ;;  %s1197_s5 = smov [#allocation12]  }
 0x164   :  { %v362_v44 = vadd.f32 %v351_v14, %v1454_v11  ;;  %s959_s13 = sshll.u32 %s1197_s5, 4  ;;  %s960_s13 = int_to_ptr.vmem [resolvable:$true] %s959_s13 }
 0x165   :  { %209 = vadd.xlane.f32.xlu0 %v208_v47  ;;  %206 = vadd.xlane.f32.xlu1 %v205_v40  ;;  %v816_v47 = vsel %vm812_vm11, %v803_v16, 0.0  ;;  %v813_v40 = vsel %vm812_vm11, %v801_v18, 0.0  ;;  %vm936_vm11 = vcmask 115712   ;;  %s1156_s14 = scalar_lea.vmem %s960_s13, 32  ;;  %p1161_p13 = scmp.lt.s32.totalorder %s960_s13, %s960_s13 }
 0x166   :  { %p1157_p12 = scmp.ne.s32.totalorder %s960_s13, %s1156_s14  ;;  %p1162_p0 = scmp.lt.s32.totalorder %s1156_s14, %s1156_s14 }
 0x168   :  { %p1163_p1 = por %p1162_p0, %p1161_p13 }
 0x169   :  { %215 = vadd.xlane.f32.xlu0 %v214_v26  ;;  %212 = vadd.xlane.f32.xlu1 %v211_v28  ;;  %v357_v26 = vpop.permute.xlu1 %356  ;;  %v355_v28 = vpop.permute.xlu0 %354 }
 0x16a   :  { %v365_v34 = vadd.f32 %v357_v26, %v1462_v38  ;;  %v364_v39 = vadd.f32 %v355_v28, %v1465_v46  ;;  %v127_v38 = vlaneseq  ;;  %v470_v46 = vmul.f32 %v450_v37, %v1330_v2  ;;  %p1164_p2 = pnand %p1163_p1, %p1157_p12 }
 0x16c   :  { %v1594_v26 = vand.u32 127, %v127_v38 }
 0x16d   :  { %115 = vadd.xlane.f32.xlu0 %v114_v32  ;;  %112 = vadd.xlane.f32.xlu1 %v111_v36  ;;  %v1015_v32 = vpop.eup %1014  ;;  %v455_v36 = vsub.f32 1.0, %v1378_v19  ;;  %v369_v41 = vpop.permute.xlu1 %368  ;;  %v457_v19 = vsub.f32 1.0, %v1386_v21 }
 0x16e   :  { %v367_v42 = vpop.permute.xlu0 %366  ;;  %v1017_v43 = vpop.eup %1016  ;;  %v459_v49 = vmul.f32 0.6931472, %v1015_v32  ;;  %v1566_v53 = vadd.f32 %v369_v41, %v363_v25  ;;  %v284_v25 = vsub.f32 1.0, %v1336_v3 }
 0x16f   :  { %v1019_v7 = vpop.eup %1018  ;;  %1026 = vlog2.f32 %v455_v36  ;;  %v1568_v54 = vadd.f32 %v367_v42, %v362_v44  ;;  %v250_v11 = vmul.f32 0.6931472, %v1017_v43 }
 0x170   :  { %1028 = vlog2.f32 %v1338_v4  ;;  %v266_v59 = vmul.f32 0.6931472, %v1019_v7  ;;  %v466_v33 = vmax.f32 %v459_v49, -100.0  ;;  %v283_v7 = vsub.f32 1.0, %v1328_v1 }
 0x171   :  { %121 = vadd.xlane.f32.xlu0 %v120_v60  ;;  %118 = vadd.xlane.f32.xlu1 %v117_v61  ;;  %v263_v60 = vsub.f32 1.0, %v1338_v4  ;;  %1030 = vlog2.f32 %v1388_v22  ;;  %v373_v61 = vpop.permute.xlu1 %372  ;;  %v394_v4 = vsub.f32 %v104_v63, %v1568_v54  ;;  %v257_v16 = vmax.f32 %v250_v11, -100.0 }
 0x172   :  { %v371_v10 = vpop.permute.xlu0 %370  ;;  %1032 = vlog2.f32 %v456_v20  ;;  %v273_v18 = vmax.f32 %v266_v59, -100.0  ;;  %v282_v20 = vsub.f32 1.0, %v1342_v6  ;;  %vm383_vm0 = vcmp.gt.f32.partialorder %v1566_v53, 0.9 }
 0x173   :  { %1034 = vlog2.f32 %v1386_v21  ;;  %vm398_vm13 = vcmp.gt.f32.partialorder %v394_v4, 0.9  ;;  %v277_v13 = vmul.f32 %v257_v16, %v1330_v2  ;;  %vm382_vm1 = vcmp.gt.f32.partialorder %v1568_v54, 0.9 }
 0x174   :  { %1036 = vlog2.f32 %v457_v19  ;;  %v285_v14 = vmul.f32 %v281_v12, %v273_v18  ;;  %v974_v27 = vsel %vm398_vm13, 1.0, %v1193_v0  ;;  %vm942_vm13 = vcmp.eq.s32.totalorder %v1594_v26, 1 }
 0x175   :  { %737 = vadd.xlane.f32.xlu0 %v736_v55  ;;  %734 = vadd.xlane.f32.xlu1 %v733_v56  ;;  %v1021_v55 = vpop.eup %1020  ;;  %v395_v56 = vsub.f32 %v105_v8, %v1566_v53  ;;  %1038 = vlog2.f32 %v263_v60  ;;  %v1600_v42 = vpop.permute.xlu1 %552 }
 0x176   :  { %v1023_v58 = vpop.eup %1022  ;;  %v252_v51 = vmul.f32 0.6931472, %v1021_v55  ;;  %1040 = vlog2.f32 %v1340_v5  ;;  %v1602_v43 = vpop.permute.xlu0 %550  ;;  %v1607_v48 = vadd.f32 %v285_v14, %v277_v13  ;;  %v971_v55 = vsel %vm383_vm0, 1.0, %v1193_v0 }
 0x177   :  { %vm399_vm12 = vcmp.gt.f32.partialorder %v395_v56, 0.9  ;;  %v268_v50 = vmul.f32 0.6931472, %v1023_v58  ;;  %1042 = vlog2.f32 %v264_v57  ;;  %v970_v56 = vsel %vm382_vm1, 1.0, %v1193_v0 }
 0x178   :  { %v975_v5 = vsel %vm399_vm12, 1.0, %v1193_v0  ;;  %v258_v32 = vmax.f32 %v252_v51, -100.0  ;;  %vm940_vm12 = vcmp.eq.s32.totalorder %v1594_v26, 0  ;;  %vm948_vm0 = vcmp.eq.s32.totalorder %v1594_v26, 4 }
 0x179   :  { %902 = vadd.xlane.f32.xlu0 %v901_v15  ;;  %899 = vadd.xlane.f32.xlu1 %v898_v17  ;;  %v1584_v15 = vadd.f32 %v373_v61, %v365_v34  ;;  %v1586_v17 = vadd.f32 %v371_v10, %v364_v39  ;;  %v274_v2 = vmax.f32 %v268_v50, -100.0  ;;  %v411_v19 = vsub.f32 1.0, %v975_v5 }
 0x17a   :  { %v278_v59 = vmul.f32 %v258_v32, %v1342_v6  ;;  %vm950_vm1 = vcmp.eq.s32.totalorder %v1594_v26, 5 }
 0x17b   :  { %v396_v52 = vsub.f32 %v104_v63, %v1586_v17  ;;  %v410_v63 = vsub.f32 1.0, %v974_v27  ;;  %v415_v16 = vsub.f32 %v971_v55, %v411_v19  ;;  %vm385_vm2 = vcmp.gt.f32.partialorder %v1584_v15, 0.9 }
 0x17c   :  { %vm384_vm3 = vcmp.gt.f32.partialorder %v1586_v17, 0.9 }
 0x17d   :  { %817 = vadd.xlane.f32.xlu0 %v816_v47  ;;  %814 = vadd.xlane.f32.xlu1 %v813_v40  ;;  %v474_v47 = vmul.f32 %v466_v33, %v281_v12  ;;  %v1025_v40 = vpop.eup %1024  ;;  %vm400_vm15 = vcmp.gt.f32.partialorder %v396_v52, 0.9  ;;  %v414_v18 = vsub.f32 %v970_v56, %v410_v63  ;;  %v419_v27 = vmax.f32 %v415_v16, 0.0 }
 0x17e   :  { %v445_v36 = vmul.f32 0.6931472, %v1025_v40  ;;  %v976_v37 = vsel %vm400_vm15, 1.0, %v1193_v0  ;;  %v286_v40 = vmul.f32 %v282_v20, %v274_v2  ;;  %vm946_vm15 = vcmp.eq.s32.totalorder %v1594_v26, 3 }
 0x17f   :  { %v1596_v28 = vadd.f32 %v474_v47, %v470_v46  ;;  %v557_v46 = vpop.permute.xlu1 %556  ;;  %v555_v47 = vpop.permute.xlu0 %554  ;;  %v418_v32 = vmax.f32 %v414_v18, 0.0 }
 0x180   :  { %v451_v60 = vmax.f32 %v445_v36, -100.0  ;;  %v973_v36 = vsel %vm385_vm2, 1.0, %v1193_v0 }
 0x181   :  { %823 = vadd.xlane.f32.xlu0 %v822_v62  ;;  %820 = vadd.xlane.f32.xlu1 %v819_v9  ;;  %v1027_v62 = vpop.eup %1026  ;;  %v397_v9 = vsub.f32 %v105_v8, %v1584_v15  ;;  %v482_v11 = vsub.f32 0.0, %v1596_v28 }
 0x182   :  { %v1029_v23 = vpop.eup %1028  ;;  %v461_v49 = vmul.f32 0.6931472, %v1027_v62  ;;  %v412_v62 = vsub.f32 1.0, %v976_v37 }
 0x183   :  { %v1031_v30 = vpop.eup %1030  ;;  %vm401_vm14 = vcmp.gt.f32.partialorder %v397_v9, 0.9  ;;  %v254_v61 = vmul.f32 0.6931472, %v1029_v23  ;;  %v471_v9 = vmul.f32 %v451_v60, %v1342_v6  ;;  %v569_v19 = vpop.permute.xlu1 %568 }
 0x184   :  { %v1033_v41 = vpop.eup %1032  ;;  %v977_v12 = vsel %vm401_vm14, 1.0, %v1193_v0  ;;  %v447_v33 = vmul.f32 0.6931472, %v1031_v30  ;;  %v467_v51 = vmax.f32 %v461_v49, -100.0  ;;  %v1622_v49 = vadd.f32 %v286_v40, %v278_v59  ;;  %v567_v6 = vpop.permute.xlu0 %566 }
 0x185   :  { %v1035_v44 = vpop.eup %1034  ;;  %v463_v34 = vmul.f32 0.6931472, %v1033_v41  ;;  %v413_v50 = vsub.f32 1.0, %v977_v12  ;;  %v972_v41 = vsel %vm384_vm3, 1.0, %v1193_v0  ;;  %v422_v59 = vmin.f32 %v418_v32, 1.0 }
 0x186   :  { %v1037_v8 = vpop.eup %1036  ;;  %v449_v4 = vmul.f32 0.6931472, %v1035_v44  ;;  %v452_v13 = vmax.f32 %v447_v33, -100.0  ;;  %v416_v44 = vsub.f32 %v972_v41, %v412_v62  ;;  %v475_v63 = vmul.f32 %v467_v51, %v282_v20 }
 0x187   :  { %v1039_v10 = vpop.eup %1038  ;;  %v465_v57 = vmul.f32 0.6931472, %v1037_v8  ;;  %v468_v14 = vmax.f32 %v463_v34, -100.0  ;;  %v417_v2 = vsub.f32 %v973_v36, %v413_v50  ;;  %v259_v8 = vmax.f32 %v254_v61, -100.0 }
 0x188   :  { %v1041_v39 = vpop.eup %1040  ;;  %v270_v52 = vmul.f32 0.6931472, %v1039_v10  ;;  %v453_v30 = vmax.f32 %v449_v4, -100.0  ;;  %v472_v10 = vmul.f32 %v452_v13, %v1328_v1  ;;  %v563_v61 = vadd.f32 %v1600_v42, %v1475_v24 }
 0x189   :  { %v1043_v58 = vpop.eup %1042  ;;  %v256_v23 = vmul.f32 0.6931472, %v1041_v39  ;;  %v469_v5 = vmax.f32 %v465_v57, -100.0  ;;  %v476_v12 = vmul.f32 %v468_v14, %v283_v7  ;;  %v423_v39 = vmin.f32 %v419_v27, 1.0 }
 0x18a   :  { %v272_v28 = vmul.f32 0.6931472, %v1043_v58  ;;  %v275_v60 = vmax.f32 %v270_v52, -100.0  ;;  %v473_v34 = vmul.f32 %v453_v30, %v1336_v3  ;;  %v562_v20 = vadd.f32 %v1602_v43, %v1477_v29  ;;  %v573_v43 = vpop.permute.xlu1 %572  ;;  %v571_v52 = vpop.permute.xlu0 %570 }
 0x18b   :  { %v260_v37 = vmax.f32 %v256_v23, -100.0  ;;  %v477_v0 = vmul.f32 %v469_v5, %v284_v25  ;;  %v421_v55 = vmax.f32 %v417_v2, 0.0  ;;  %v420_v56 = vmax.f32 %v416_v44, 0.0 }
 0x18c   :  { %v276_v33 = vmax.f32 %v272_v28, -100.0  ;;  %v293_v4 = vsub.f32 0.0, %v1607_v48  ;;  %v486_v57 = vmul.f32 0.2, %v482_v11  ;;  %v579_v58 = vadd.f32 %v569_v19, %v563_v61 }
 0x18d   :  { %v578_v16 = vadd.f32 %v567_v6, %v562_v20  ;;  %v294_v18 = vsub.f32 0.0, %v1622_v49  ;;  %v279_v40 = vmul.f32 %v259_v8, %v1328_v1  ;;  %v479_v51 = vadd.f32 %v475_v63, %v471_v9 }
 0x18e   :  { %v287_v50 = vmul.f32 %v283_v7, %v275_v60  ;;  %v480_v62 = vadd.f32 %v476_v12, %v472_v10  ;;  %v280_v24 = vmul.f32 %v260_v37, %v1336_v3  ;;  %v427_v42 = vmul.f32 1.5, %v423_v39 }
 0x18f   :  { %v426_v29 = vmul.f32 1.5, %v422_v59  ;;  %v288_v48 = vmul.f32 %v284_v25, %v276_v33  ;;  %v481_v11 = vadd.f32 %v477_v0, %v473_v34  ;;  %v425_v13 = vmin.f32 %v421_v55, 1.0 }
 0x190   :  { %v424_v14 = vmin.f32 %v420_v56, 1.0  ;;  %v565_v23 = vadd.f32 %v557_v46, %v1483_v31  ;;  %v564_v9 = vadd.f32 %v555_v47, %v1485_v35  ;;  %v583_v28 = vsub.f32 %v579_v58, %v1566_v53 }
 0x191   :  { %v582_v7 = vsub.f32 %v578_v16, %v1568_v54  ;;  %v874_v30 = vrot.slane %v1328_v1, 7  ;;  %v875_v5 = vrot.slane %v1336_v3, 7  ;;  %v483_v36 = vsub.f32 0.0, %v479_v51 }
 0x192   :  { %v581_v27 = vadd.f32 %v573_v43, %v565_v23  ;;  %v580_v32 = vadd.f32 %v571_v52, %v564_v9  ;;  %v291_v41 = vadd.f32 %v287_v50, %v279_v40  ;;  %v430_v25 = vadd.f32 0.7, %v426_v29 }
 0x193   :  { %v431_v2 = vadd.f32 0.7, %v427_v42  ;;  %v484_v44 = vsub.f32 0.0, %v480_v62  ;;  %v292_v49 = vadd.f32 %v288_v48, %v280_v24  ;;  %v429_v8 = vmul.f32 1.5, %v425_v13 }
 0x194   :  { %v428_v31 = vmul.f32 1.5, %v424_v14  ;;  %v485_v46 = vsub.f32 0.0, %v481_v11  ;;  %v856_v35 = vrot.slane %v1388_v22, 7  ;;  %v587_v53 = vand.u32 2147483647, %v583_v28 }
 0x195   :  { %v586_v47 = vand.u32 2147483647, %v582_v7  ;;  %v857_v19 = vrot.slane %v1386_v21, 7  ;;  %v876_v6 = vsel %vm852_vm8, %v874_v30, %v875_v5  ;;  %v585_v63 = vsub.f32 %v581_v27, %v1584_v15 }
 0x196   :  { %v584_v60 = vsub.f32 %v580_v32, %v1586_v17  ;;  %v487_v10 = vmul.f32 0.2, %v483_v36  ;;  %v295_v12 = vsub.f32 0.0, %v291_v41  ;;  %v434_v37 = vmul.f32 %v430_v25, %v293_v4 }
 0x197   :  { %v435_v33 = vmul.f32 %v431_v2, %v294_v18  ;;  %v488_v34 = vmul.f32 0.2, %v484_v44  ;;  %v883_v0 = vsub.f32 %v1328_v1, %v874_v30  ;;  %v432_v39 = vadd.f32 0.7, %v428_v31 }
 0x198   :  { %v296_v59 = vsub.f32 0.0, %v292_v49  ;;  %v433_v61 = vadd.f32 0.7, %v429_v8  ;;  %v884_v20 = vsub.f32 %v1336_v3, %v876_v6  ;;  %v591_v55 = vmul.f32 0.01, %v587_v53 }
 0x199   :  { %v590_v56 = vmul.f32 0.01, %v586_v47  ;;  %v489_v40 = vmul.f32 0.2, %v485_v46  ;;  %v858_v15 = vsel %vm852_vm8, %v856_v35, %v857_v19  ;;  %v589_v17 = vand.u32 2147483647, %v585_v63 }
 0x19a   :  { %v588_v51 = vand.u32 2147483647, %v584_v60  ;;  %v133_v4 = vadd.s32 4294967288, %v1594_v26  ;;  %v490_v18 = vadd.f32 %v486_v57, %v434_v37  ;;  %v491_v50 = vadd.f32 %v487_v10, %v435_v33 }
 0x19b   :  { %v865_v1 = vsub.f32 %v1388_v22, %v856_v35  ;;  %v887_v62 = vand.u32 2147483647, %v883_v0  ;;  %v436_v24 = vmul.f32 %v432_v39, %v295_v12  ;;  %v437_v42 = vmul.f32 %v433_v61, %v296_v59 }
 0x19c   :  { %v866_v3 = vsub.f32 %v1386_v21, %v858_v15  ;;  %v888_v29 = vand.u32 2147483647, %v884_v20  ;;  %v1662_v43 = vshrl.u32 %v127_v38, 7  ;;  %v594_v11 = vadd.f32 %v590_v56, %v490_v18 }
 0x19d   :  { %v595_v13 = vadd.f32 %v591_v55, %v491_v50  ;;  %v593_v14 = vmul.f32 0.01, %v589_v17  ;;  %v592_v23 = vmul.f32 0.01, %v588_v51  ;;  %v869_v21 = vand.u32 2147483647, %v865_v1 }
 0x19e   :  { %v1667_v22 = vsub.s32 %v133_v4, %v1662_v43  ;;  %v891_v28 = vsub.f32 1.0, %v887_v62  ;;  %v492_v7 = vadd.f32 %v488_v34, %v436_v24  ;;  %v493_v38 = vadd.f32 %v489_v40, %v437_v42 }
 0x19f   :  { %v870_v30 = vand.u32 2147483647, %v866_v3  ;;  %v892_v5 = vsub.f32 1.0, %v888_v29  ;;  %v1671_v27 = vsub.s32 %v1594_v26, %v1662_v43  ;;  %v598_v32 = vsel %vm110_vm6, %v594_v11, 0.0 }
 0x1a0   :  { %v601_v36 = vsel %vm110_vm6, %v595_v13, 0.0  ;;  %v596_v41 = vadd.f32 %v592_v23, %v492_v7  ;;  %v597_v25 = vadd.f32 %v593_v14, %v493_v38  ;;  %v895_v49 = vmul.f32 %v891_v28, %v869_v21 }
 0x1a1   :  { %v896_v8 = vmul.f32 %v892_v5, %v870_v30  ;;  %v181_v31 = vrot.slane %v1548_v45, %v1671_v27  ;;  %vm152_vm8 = vcmask 123904   ;;  %v741_v15 = vadd.s32 1, %v1594_v26 }
 0x1a2   :  { %v604_v35 = vsel %vm110_vm6, %v596_v41, 0.0  ;;  %v607_v53 = vsel %vm110_vm6, %v597_v25, 0.0  ;;  %v904_v47 = vsel %vm897_vm10, %v895_v49, 0.0  ;;  %vm923_vm10 = vcmask 121912  }
 0x1a3   :  { %v907_v19 = vsel %vm110_vm6, %v896_v8, 0.0  ;;  %v1703_v50 = vsub.s32 %v741_v15, %v1662_v43  ;;  %vm752_vm6 = vcmask 50176   ;;  %vm944_vm14 = vcmp.eq.s32.totalorder %v1594_v26, 2 }
 0x1b9   :  { %v1649_v54 = vpop.xlane.xlu0 %169 }
 0x1ba   :  { %v190_v46 = vrot.slane %v1649_v54, %v1671_v27 }
 0x1bd   :  { %v173_v58 = vpop.xlane.xlu0 %172  ;;  %v167_v16 = vpop.xlane.xlu1 %166 }
 0x1be   :  { %v194_v2 = vrot.slane %v173_v58, %v1667_v22  ;;  %v185_v44 = vrot.slane %v167_v16, %v1667_v22 }
 0x1c0   :  { %v186_v6 = vsel %vm138_vm5, %v185_v44, %v181_v31  ;;  %v195_v63 = vsel %vm138_vm5, %v194_v2, %v190_v46  ;;  %v918_v44 = vadd.s32 4294967289, %v1594_v26 }
 0x1c1   :  { %v676_v52 = vpop.permute.xlu0 %675  ;;  %v678_v48 = vpop.permute.xlu1 %677  ;;  %v196_v45 = vsel %vm149_vm7, %v195_v63, %v186_v6 }
 0x1c2   :  { %v682_v57 = vsel %vm681_vm4, %v676_v52, 0.0  ;;  %v685_v9 = vsel %vm681_vm4, %v678_v48, 0.0  ;;  %v198_v54 = vsel %vm152_vm8, %v196_v45, 0.0 }
 0x1c3   :  { %683 = vadd.xlane.f32.xlu1 %v682_v57  ;;  %686 = vadd.xlane.f32.xlu0 %v685_v9 }
 0x1c7   :  { %599 = vadd.xlane.f32.xlu1 %v598_v32  ;;  %602 = vadd.xlane.f32.xlu0 %v601_v36 }
 0x1cb   :  { %605 = vadd.xlane.f32.xlu1 %v604_v35  ;;  %608 = vadd.xlane.f32.xlu0 %v607_v53 }
 0x1cf   :  { %905 = vadd.xlane.f32.xlu1 %v904_v47  ;;  %908 = vadd.xlane.f32.xlu0 %v907_v19  ;;  %v921_v47 = vsub.s32 %v918_v44, %v1662_v43 }
 0x1d3   :  { %199 = vadd.xlane.f32.xlu1 %v198_v54 }
 0x1f2   :  { %v210_v60 = vpop.xlane.xlu0 %209  ;;  %v207_v10 = vpop.xlane.xlu1 %206 }
 0x1f3   :  { %v228_v12 = vrot.slane %v210_v60, %v1667_v22  ;;  %v224_v37 = vrot.slane %v207_v10, %v1671_v27 }
 0x1f5   :  { %v229_v59 = vsel %vm138_vm5, %v228_v12, %v224_v37 }
 0x1f6   :  { %v216_v33 = vpop.xlane.xlu0 %215  ;;  %v213_v34 = vpop.xlane.xlu1 %212 }
 0x1f7   :  { %v237_v0 = vrot.slane %v216_v33, %v1667_v22  ;;  %v233_v39 = vrot.slane %v213_v34, %v1671_v27 }
 0x1f9   :  { %v238_v61 = vsel %vm138_vm5, %v237_v0, %v233_v39 }
 0x1fa   :  { %v116_v20 = vpop.xlane.xlu0 %115  ;;  %v113_v55 = vpop.xlane.xlu1 %112  ;;  %v239_v56 = vsel %vm149_vm7, %v238_v61, %v229_v59 }
 0x1fb   :  { %v137_v58 = vrot.slane %v116_v20, %v1667_v22  ;;  %v132_v16 = vrot.slane %v113_v55, %v1671_v27  ;;  %v241_v40 = vsel %vm152_vm8, %v239_v56, 0.0 }
 0x1fc   :  { %242 = vadd.xlane.f32.xlu0 %v241_v40 }
 0x1fd   :  { %v139_v1 = vsel %vm138_vm5, %v137_v58, %v132_v16 }
 0x1fe   :  { %v122_v17 = vpop.xlane.xlu0 %121  ;;  %v119_v51 = vpop.xlane.xlu1 %118 }
 0x1ff   :  { %v147_v4 = vrot.slane %v122_v17, %v1667_v22  ;;  %v143_v18 = vrot.slane %v119_v51, %v1671_v27 }
 0x201   :  { %v148_v62 = vsel %vm138_vm5, %v147_v4, %v143_v18 }
 0x202   :  { %v738_v24 = vpop.xlane.xlu0 %737  ;;  %v735_v42 = vpop.xlane.xlu1 %734  ;;  %v150_v3 = vsel %vm149_vm7, %v148_v62, %v139_v1 }
 0x203   :  { %v749_v29 = vrot.slane %v738_v24, %v1703_v50  ;;  %v745_v52 = vrot.slane %v735_v42, %v1703_v50  ;;  %v153_v48 = vsel %vm152_vm8, %v150_v3, 0.0 }
 0x204   :  { %154 = vadd.xlane.f32.xlu1 %v153_v48 }
 0x205   :  { %v750_v11 = vsel %vm149_vm7, %v749_v29, %v745_v52 }
 0x206   :  { %v753_v13 = vsel %vm752_vm6, %v750_v11, 0.0  ;;  %v903_v14 = vpop.xlane.xlu0 %902  ;;  %v900_v23 = vpop.xlane.xlu1 %899 }
 0x207   :  { %754 = vadd.xlane.f32.xlu0 %v753_v13  ;;  %v922_v12 = vrot.slane %v903_v14, %v921_v47  ;;  %v917_v37 = vrot.slane %v900_v23, %v1703_v50 }
 0x20a   :  { %v818_v57 = vpop.xlane.xlu0 %817  ;;  %v815_v9 = vpop.xlane.xlu1 %814 }
 0x20b   :  { %v836_v30 = vrot.slane %v818_v57, %v1667_v22  ;;  %v832_v5 = vrot.slane %v815_v9, %v1671_v27 }
 0x20d   :  { %v837_v35 = vsel %vm138_vm5, %v836_v30, %v832_v5 }
 0x20e   :  { %v824_v21 = vpop.xlane.xlu0 %823  ;;  %v821_v28 = vpop.xlane.xlu1 %820 }
 0x20f   :  { %v845_v7 = vrot.slane %v824_v21, %v1667_v22  ;;  %v841_v38 = vrot.slane %v821_v28, %v1671_v27 }
 0x211   :  { %v846_v2 = vsel %vm138_vm5, %v845_v7, %v841_v38 }
 0x212   :  { %v847_v53 = vsel %vm149_vm7, %v846_v2, %v837_v35 }
 0x213   :  { %v849_v54 = vsel %vm152_vm8, %v847_v53, 0.0 }
 0x250   :  { %v684_v32 = vpop.xlane.xlu1 %683  ;;  %v687_v36 = vpop.xlane.xlu0 %686 }
 0x251   :  { %v693_v41 = vrot.slane %v684_v32, %v1671_v27  ;;  %v697_v25 = vrot.slane %v687_v36, %v1671_v27 }
 0x253   :  { %v698_v49 = vsel %vm149_vm7, %v697_v25, %v693_v41 }
 0x254   :  { %v600_v8 = vpop.xlane.xlu1 %599  ;;  %v603_v31 = vpop.xlane.xlu0 %602  ;;  %v701_v46 = vsel %vm700_vm9, %v698_v49, 0.0 }
 0x255   :  { %702 = vadd.xlane.f32.xlu1 %v701_v46  ;;  %v617_v19 = vrot.slane %v600_v8, %v1671_v27  ;;  %v621_v6 = vrot.slane %v603_v31, %v1667_v22 }
 0x257   :  { %v622_v33 = vsel %vm138_vm5, %v621_v6, %v617_v19 }
 0x258   :  { %v606_v63 = vpop.xlane.xlu1 %605  ;;  %v609_v45 = vpop.xlane.xlu0 %608 }
 0x259   :  { %v626_v60 = vrot.slane %v606_v63, %v1671_v27  ;;  %v630_v10 = vrot.slane %v609_v45, %v1667_v22  ;;  %850 = vadd.xlane.f32.xlu1 %v849_v54  ;;  %v924_v22 = vsel %vm923_vm10, %v922_v12, %v917_v37 }
 0x25b   :  { %v631_v43 = vsel %vm138_vm5, %v630_v10, %v626_v60 }
 0x25c   :  { %v906_v34 = vpop.xlane.xlu1 %905  ;;  %v909_v0 = vpop.xlane.xlu0 %908  ;;  %v632_v39 = vsel %vm149_vm7, %v631_v43, %v622_v33 }
 0x25d   :  { %v928_v59 = vrot.slane %v906_v34, %v1703_v50  ;;  %v932_v61 = vrot.slane %v909_v0, %v921_v47  ;;  %v634_v27 = vsel %vm152_vm8, %v632_v39, 0.0 }
 0x25e   :  { %635 = vadd.xlane.f32.xlu0 %v634_v27 }
 0x25f   :  { %v933_v20 = vsel %vm923_vm10, %v932_v61, %v928_v59 }
 0x260   :  { %v934_v55 = vsel %vm149_vm7, %v933_v20, %v924_v22  ;;  %v200_v16 = vpop.xlane.xlu1 %199 }
 0x261   :  { %v937_v56 = vsel %vm936_vm11, %v934_v55, 0.0 }
 0x262   :  { %938 = vadd.xlane.f32.xlu0 %v937_v56 }
 0x289   :  { %v243_v58 = vpop.xlane.xlu0 %242 }
 0x28a   :  { %v244_v40 = vadd.f32 %v243_v58, %v200_v16 }
 0x28c   :  { %v245_v15 = vadd.f32 1e-06, %v244_v40 }
 0x28e   :  { %1044 = vrcp.f32 %v245_v15 }
 0x291   :  { %v155_v17 = vpop.xlane.xlu1 %154 }
 0x292   :  { %v156_v51 = vmul.f32 2.0, %v155_v17 }
 0x294   :  { %v157_v4 = vadd.f32 1e-06, %v156_v51  ;;  %v755_v62 = vpop.xlane.xlu0 %754 }
 0x298   :  { %v1045_v18 = vpop.eup %1044 }
 0x299   :  { %v247_v50 = vmul.f32 %v1045_v18, %v157_v4 }
 0x29b   :  { %v248_v1 = vsub.f32 1.0, %v247_v50 }
 0x29d   :  { %v941_v3 = vsel %vm940_vm12, %v248_v1, 0.0 }
 0x2e2   :  { %v703_v24 = vpop.xlane.xlu1 %702 }
 0x2e6   :  { %v851_v48 = vpop.xlane.xlu1 %850 }
 0x2eb   :  { %v636_v42 = vpop.xlane.xlu0 %635 }
 0x2ec   :  { %v943_v29 = vsel %vm942_vm13, %v636_v42, %v941_v3 }
 0x2ed   :  { %v945_v52 = vsel %vm944_vm14, %v703_v24, %v943_v29 }
 0x2ee   :  { %v947_v11 = vsel %vm946_vm15, %v755_v62, %v945_v52 }
 0x2ef   :  { %v939_v13 = vpop.xlane.xlu0 %938  ;;  %v949_v14 = vsel %vm948_vm0, %v851_v48, %v947_v11 }
 0x2f0   :  { %v951_v23 = vsel %vm950_vm1, %v939_v13, %v949_v14 }
 0x2f1   :  { %952 = vst [vmem:[#allocation12] sm:$0x3] %v951_v23 }
 0x2f2   :  { %1167 = shalt.err (!%p1164_p2)
}
 0x2f3   :  { %s1168_s17 = scalar_lea.hbm %s1760_s6, 32 }
 0x2f4   :  { %p1169_p3 = scmp.ne.s32.totalorder %s1760_s6, %s1168_s17  ;;  %p1172_p4 = scmp.lt.u32.totalorder %s1168_s17, %s1760_s6 }
 0x2f6   :  { %p1174_p5 = pnand %p1172_p4, %p1169_p3 }
 0x2f8   :  { %1177 = shalt.err (!%p1174_p5)
}
 0x2f9   :  { %962 = dma.vmem_to_hbm [thread:$0]  %s960_s13, 32, %s1760_s6, [#allocation5]  }
 0x2fa   :  { %1184 = dma.done.wait [#allocation5], 32  }
 0x2fb   :  { %1185 = vsyncadd [#allocation5], 4294967264 }
 0x2fc   :  { %966 = vsyncpa [#allocation4], 1 }
 0x2fd   :  { %967 = vsyncpa [#allocation7], 1 }
 0x2fe   :  { %968 = vsyncpa [#allocation10], 1 }
 0x2ff   :  { %969 = vsyncpa [#allocation5], 1 }

</bundles_post_ra>
